<compile_context>
chip_gen: v5e
topology: v5e:2x2
jax: 0.10.0
libtpu: 0.0.40
codegen_flags: <defaults>
</compile_context>

<pallas_src>
import jax
import jax.numpy as jnp
from jax.experimental import pallas as pl
from jax.experimental.pallas import tpu as pltpu

# Embedding layer chain (BN -> ReLU -> Linear), final output dim 2 to match
# ClassificationNet.fc1 = nn.Linear(2, n_classes).
DIMS = [200, 500, 100, 20, 20, 20, 2]
N_LAYERS = 6
BN_EPS = 1e-5

# Padded (lane-dense) widths.
P0 = 256       # 200 -> 256   (padded input / BN0 width)
P1 = 512       # 500 -> 512   (padded hidden-1 width)
PH = 128       # 100/20/2/n_classes -> 128
VEC_W = 512    # width of the packed vector slab
VEC_ROWS = 16  # rows of the packed vector slab (10 used, padded to 16)
NEG_MASK = -1e30  # bias value for padded logit lanes (softmax mask)

# Row layout of the packed f32 vector slab.
ROW_SCALE0, ROW_SHIFT0 = 0, 1
ROW_B0, ROW_B1, ROW_B2, ROW_B3, ROW_B4, ROW_B5 = 2, 3, 4, 5, 6, 7
ROW_BC, ROW_ALPHA = 8, 9


def _round_up(x, m):
    return ((x + m - 1) // m) * m


# --------------------------------------------------------------------------
# Kernel
# --------------------------------------------------------------------------
def classification_net_kernel(x_ref, vec_ref, w0_ref, w1_ref, wtail_ref, out_ref):
    f32 = jnp.float32
    x = x_ref[...]  # (TB, 256) f32, zero-padded lanes

    # Embedding layer 0: BN0 (folded scale/shift) -> ReLU -> Linear(200->500)
    # (BN1 already folded into w0/b0 host-side.)
    h = jnp.maximum(
        x * vec_ref[ROW_SCALE0:ROW_SCALE0 + 1, :P0]
        + vec_ref[ROW_SHIFT0:ROW_SHIFT0 + 1, :P0], 0.0)
    h = jnp.dot(h.astype(jnp.bfloat16), w0_ref[...],
                preferred_element_type=f32) + vec_ref[ROW_B0:ROW_B0 + 1, :]

    # Layer 1: ReLU -> Linear(500->100)  (BN2 folded)
    h = jnp.maximum(h, 0.0)
    h = jnp.dot(h.astype(jnp.bfloat16), w1_ref[...],
                preferred_element_type=f32) + vec_ref[ROW_B1:ROW_B1 + 1, :PH]

    # Layers 2..5: ReLU -> Linear(100->20, 20->20, 20->20, 20->2)
    # (BN3..BN5 folded into layers 2..4; layer 5 is the 2-d embedding head.)
    for l in range(4):
        h = jnp.maximum(h, 0.0)
        h = jnp.dot(h.astype(jnp.bfloat16), wtail_ref[l],
                    preferred_element_type=f32) \
            + vec_ref[ROW_B2 + l:ROW_B2 + l + 1, :PH]

    # ClassificationNet head: PReLU -> fc1(2 -> n_classes) -> log_softmax.
    alpha = vec_ref[ROW_ALPHA:ROW_ALPHA + 1, 0:1]          # (1, 1)
    h = jnp.where(h > 0, h, alpha * h)                      # PReLU (padded lanes stay 0)
    logits = jnp.dot(h.astype(jnp.bfloat16), wtail_ref[4],
                     preferred_element_type=f32) + vec_ref[ROW_BC:ROW_BC + 1, :PH]

    # log_softmax over the 128-lane slab; padded lanes hold -1e30 so exp -> 0.
    m = jnp.max(logits, axis=-1, keepdims=True)
    z = logits - m
    lse = jnp.log(jnp.sum(jnp.exp(z), axis=-1, keepdims=True))
    out_ref[...] = (z - lse).astype(out_ref.dtype)


# --------------------------------------------------------------------------
# Parameter construction / packing (host side)
# --------------------------------------------------------------------------
def init_params(key, n_classes):
    """Deterministic synthetic parameters mirroring the nn.Module layout."""
    layers = []
    for l in range(N_LAYERS):
        fan_in, fan_out = DIMS[l], DIMS[l + 1]
        key, kg, kb, km, kv, kw, kbias = jax.random.split(key, 7)
        gamma = jax.random.uniform(kg, (fan_in,), jnp.float32, 0.5, 1.5)
        beta = 0.1 * jax.random.normal(kb, (fan_in,), jnp.float32)
        mean = 0.1 * jax.random.normal(km, (fan_in,), jnp.float32)
        var = jax.random.uniform(kv, (fan_in,), jnp.float32, 0.5, 1.5)
        k = 1.0 / jnp.sqrt(jnp.float32(fan_in))
        w = jax.random.uniform(kw, (fan_in, fan_out), jnp.float32, -k, k)  # (in, out)
        b = jax.random.uniform(kbias, (fan_out,), jnp.float32, -k, k)
        layers.append((gamma, beta, mean, var, w, b))

    key, kw1, kb1 = jax.random.split(key, 3)
    alpha = jnp.float32(0.25)  # nn.PReLU() default init
    kf = 1.0 / jnp.sqrt(jnp.float32(DIMS[-1]))
    fc1_w = jax.random.uniform(kw1, (DIMS[-1], n_classes), jnp.float32, -kf, kf)
    fc1_b = jax.random.uniform(kb1, (n_classes,), jnp.float32, -kf, kf)
    return {"embedding": layers, "prelu_alpha": alpha, "fc1_w": fc1_w, "fc1_b": fc1_b}


def _pad2(w, pi, po):
    return jnp.zeros((pi, po), jnp.float32).at[:w.shape[0], :w.shape[1]].set(w)


def _pad1(v, p, fill=0.0):
    return jnp.full((p,), fill, jnp.float32).at[:v.shape[0]].set(v)


def pack_params(raw):
    """Fold BN1..BN5 into the previous Linear, pad dims, pack into 4 buffers."""
    layers = raw["embedding"]
    scales, shifts = [], []
    for (gamma, beta, mean, var, _, _) in layers:
        s = gamma / jnp.sqrt(var + BN_EPS)
        scales.append(s)
        shifts.append(beta - mean * s)

    ws, bs = [], []
    for l in range(N_LAYERS):
        w, b = layers[l][4], layers[l][5]
        if l + 1 < N_LAYERS:                       # fold the *next* layer's BN
            w = w * scales[l + 1][None, :]
            b = b * scales[l + 1] + shifts[l + 1]
        ws.append(w)
        bs.append(b)

    w0 = _pad2(ws[0], P0, P1).astype(jnp.bfloat16)          # (256, 512)
    w1 = _pad2(ws[1], P1, PH).astype(jnp.bfloat16)          # (512, 128)
    wtail = jnp.stack([
        _pad2(ws[2], PH, PH), _pad2(ws[3], PH, PH), _pad2(ws[4], PH, PH),
        _pad2(ws[5], PH, PH), _pad2(raw["fc1_w"], PH, PH),
    ]).astype(jnp.bfloat16)                                  # (5, 128, 128)

    vec = jnp.stack([
        _pad1(scales[0], VEC_W),
        _pad1(shifts[0], VEC_W),
        _pad1(bs[0], VEC_W),
        _pad1(bs[1], VEC_W),
        _pad1(bs[2], VEC_W),
        _pad1(bs[3], VEC_W),
        _pad1(bs[4], VEC_W),
        _pad1(bs[5], VEC_W),
        _pad1(raw["fc1_b"], VEC_W, fill=NEG_MASK),   # padded logit lanes masked
        _pad1(jnp.reshape(raw["prelu_alpha"], (1,)), VEC_W),
    ])
    vec = jnp.pad(vec, ((0, VEC_ROWS - vec.shape[0]), (0, 0)))  # (16, 512) f32
    return vec, w0, w1, wtail


# --------------------------------------------------------------------------
# Wrapper
# --------------------------------------------------------------------------
def classification_net(x, packed, *, n_classes, block_rows=256):
    """x: (B, 200) f32 -> (B, n_classes) log-probabilities."""
    vec, w0, w1, wtail = packed
    B, F = x.shape
    assert F == DIMS[0]
    assert block_rows % 8 == 0

    tb = min(block_rows, _round_up(B, 8))
    b_pad = _round_up(B, tb)
    x_p = jnp.pad(x.astype(jnp.float32), ((0, b_pad - B), (0, P0 - F)))

    out = pl.pallas_call(
        classification_net_kernel,
        out_shape=jax.ShapeDtypeStruct((b_pad, PH), jnp.float32),
        grid=(b_pad // tb,),
        in_specs=[
            pl.BlockSpec((tb, P0), lambda i: (i, 0)),        # x: tiled over batch
            pl.BlockSpec(vec.shape, lambda i: (0, 0)),       # params: VMEM-resident
            pl.BlockSpec(w0.shape, lambda i: (0, 0)),
            pl.BlockSpec(w1.shape, lambda i: (0, 0)),
            pl.BlockSpec(wtail.shape, lambda i: (0, 0, 0)),
        ],
        out_specs=pl.BlockSpec((tb, PH), lambda i: (i, 0)),
        compiler_params=pltpu.CompilerParams(
            dimension_semantics=("parallel",)),
    )(x_p, vec, w0, w1, wtail)
    return out[:B, :n_classes]


# --------------------------------------------------------------------------
# References
# --------------------------------------------------------------------------
def reference_module(x, raw):
    """Pure-f32 reference faithful to the PyTorch module (unfolded params)."""
    h = x.astype(jnp.float32)
    for (gamma, beta, mean, var, w, b) in raw["embedding"]:
        scale = gamma / jnp.sqrt(var + BN_EPS)
        h = jnp.maximum(h * scale + (beta - mean * scale), 0.0)
        h = h @ w + b
    a = raw["prelu_alpha"]
    h = jnp.where(h > 0, h, a * h)
    logits = h @ raw["fc1_w"] + raw["fc1_b"]
    return jax.nn.log_softmax(logits, axis=-1)


def reference_packed(x, packed, n_classes):
    """Mirrors the kernel math (folded/padded bf16 weights, f32 accumulation)."""
    vec, w0, w1, wtail = packed
    B, F = x.shape
    h = jnp.pad(x.astype(jnp.float32), ((0, 0), (0, P0 - F)))
    h = jnp.maximum(h * vec[ROW_SCALE0:ROW_SCALE0 + 1, :P0]
                    + vec[ROW_SHIFT0:ROW_SHIFT0 + 1, :P0], 0.0)
    h = jnp.dot(h.astype(jnp.bfloat16), w0,
                preferred_element_type=jnp.float32) + vec[ROW_B0:ROW_B0 + 1, :]
    h = jnp.maximum(h, 0.0)
    h = jnp.dot(h.astype(jnp.bfloat16), w1,
                preferred_element_type=jnp.float32) + vec[ROW_B1:ROW_B1 + 1, :PH]
    for l in range(4):
        h = jnp.maximum(h, 0.0)
        h = jnp.dot(h.astype(jnp.bfloat16), wtail[l],
                    preferred_element_type=jnp.float32) \
            + vec[ROW_B2 + l:ROW_B2 + l + 1, :PH]
    alpha = vec[ROW_ALPHA, 0]
    h = jnp.where(h > 0, h, alpha * h)
    logits = jnp.dot(h.astype(jnp.bfloat16), wtail[4],
                     preferred_element_type=jnp.float32) + vec[ROW_BC:ROW_BC + 1, :PH]
    m = jnp.max(logits, axis=-1, keepdims=True)
    z = logits - m
    lse = jnp.log(jnp.sum(jnp.exp(z), axis=-1, keepdims=True))
    return (z - lse)[:, :n_classes]


# --------------------------------------------------------------------------
if __name__ == "__main__":
    key = jax.random.PRNGKey(0)
    key, kx, kp = jax.random.split(key, 3)

    B, n_classes = 64, 10
    x = jax.random.normal(kx, (B, DIMS[0]), jnp.float32)
    raw = init_params(kp, n_classes)
    packed = pack_params(raw)

    # block_rows=32 -> 2 grid steps at B=64, exercising the batch pipeline;
    # use the default 256 (or larger) for realistic batch sizes.
    out = classification_net(x, packed, n_classes=n_classes, block_rows=32)
    out = jax.block_until_ready(out)

    assert out.shape == (B, n_classes)

    # Tight check vs. a reference that mirrors the kernel's bf16/f32 numerics.
    ref_p = reference_packed(x, packed, n_classes)
    assert jnp.allclose(out, ref_p, atol=1e-3, rtol=1e-3), \
        float(jnp.max(jnp.abs(out - ref_p)))

    # Loose check vs. the pure-f32 module semantics (bf16 operand rounding).
    ref_m = reference_module(x, raw)
    assert jnp.allclose(out, ref_m, atol=1e-1, rtol=1e-1), \
        float(jnp.max(jnp.abs(out - ref_m)))

    # Rows are valid log-probabilities.
    assert jnp.allclose(jnp.sum(jnp.exp(out), axis=-1), 1.0, atol=1e-3)

    print("KERNEL_OK")
</pallas_src>

<mosaic_0001>
module attributes {stable_mosaic.version = 11 : i64} {
  func.func @classification_net_kernel(%arg0: i32, %arg1: memref<32x256xf32, #tpu.memory_space<vmem>>, %arg2: memref<16x512xf32, #tpu.memory_space<vmem>>, %arg3: memref<256x512xbf16, #tpu.memory_space<vmem>>, %arg4: memref<512x128xbf16, #tpu.memory_space<vmem>>, %arg5: memref<5x128x128xbf16, #tpu.memory_space<vmem>>, %arg6: memref<32x128xf32, #tpu.memory_space<vmem>>) attributes {dimension_semantics = [#tpu.dimension_semantics<parallel>], iteration_bounds = array<i64: 2>, scalar_prefetch = 0 : i64, scratch_operands = 0 : i64, tpu.core_type = #tpu.core_type<tc>, window_params = [{transform_indices = @transform_0, window_bounds = array<i64: 32, 256>}, {pipeline_mode = #tpu.pipeline_mode<synchronous>, transform_indices = @transform_1, window_bounds = array<i64: 16, 512>}, {pipeline_mode = #tpu.pipeline_mode<synchronous>, transform_indices = @transform_2, window_bounds = array<i64: 256, 512>}, {pipeline_mode = #tpu.pipeline_mode<synchronous>, transform_indices = @transform_3, window_bounds = array<i64: 512, 128>}, {pipeline_mode = #tpu.pipeline_mode<synchronous>, transform_indices = @transform_4, window_bounds = array<i64: 5, 128, 128>}, {transform_indices = @transform_5, window_bounds = array<i64: 32, 128>}]} {
    %c0 = arith.constant 0 : index
    %c0_0 = arith.constant 0 : index
    %0 = vector.load %arg1[%c0, %c0_0] : memref<32x256xf32, #tpu.memory_space<vmem>>, vector<32x256xf32>
    %c0_1 = arith.constant 0 : index
    %c0_2 = arith.constant 0 : index
    %1 = vector.load %arg2[%c0_1, %c0_2] : memref<16x512xf32, #tpu.memory_space<vmem>>, vector<1x256xf32>
    %2 = vector.broadcast %1 : vector<1x256xf32> to vector<32x256xf32>
    %3 = arith.mulf %0, %2 : vector<32x256xf32>
    %c1 = arith.constant 1 : index
    %c0_3 = arith.constant 0 : index
    %4 = vector.load %arg2[%c1, %c0_3] : memref<16x512xf32, #tpu.memory_space<vmem>>, vector<1x256xf32>
    %5 = vector.broadcast %4 : vector<1x256xf32> to vector<32x256xf32>
    %6 = arith.addf %3, %5 : vector<32x256xf32>
    %cst = arith.constant 0.000000e+00 : f32
    %7 = vector.broadcast %cst : f32 to vector<32x256xf32>
    %8 = arith.maximumf %6, %7 : vector<32x256xf32>
    %9 = arith.truncf %8 : vector<32x256xf32> to vector<32x256xbf16>
    %c0_4 = arith.constant 0 : index
    %c0_5 = arith.constant 0 : index
    %10 = vector.load %arg3[%c0_4, %c0_5] : memref<256x512xbf16, #tpu.memory_space<vmem>>, vector<256x512xbf16>
    %cst_6 = arith.constant dense<0.000000e+00> : vector<32x512xf32>
    %11 = tpu.matmul %9, %10, %cst_6 {dimension_numbers = #tpu.dot_dimension_numbers<[1], [0], [0], [1], [0, 0, 1, 1], [], []>} : vector<32x256xbf16>, vector<256x512xbf16>, vector<32x512xf32> -> vector<32x512xf32>
    %c2 = arith.constant 2 : index
    %c0_7 = arith.constant 0 : index
    %12 = vector.load %arg2[%c2, %c0_7] : memref<16x512xf32, #tpu.memory_space<vmem>>, vector<1x512xf32>
    %13 = vector.broadcast %12 : vector<1x512xf32> to vector<32x512xf32>
    %14 = arith.addf %11, %13 : vector<32x512xf32>
    %cst_8 = arith.constant 0.000000e+00 : f32
    %15 = vector.broadcast %cst_8 : f32 to vector<32x512xf32>
    %16 = arith.maximumf %14, %15 : vector<32x512xf32>
    %17 = arith.truncf %16 : vector<32x512xf32> to vector<32x512xbf16>
    %c0_9 = arith.constant 0 : index
    %c0_10 = arith.constant 0 : index
    %18 = vector.load %arg4[%c0_9, %c0_10] : memref<512x128xbf16, #tpu.memory_space<vmem>>, vector<512x128xbf16>
    %cst_11 = arith.constant dense<0.000000e+00> : vector<32x128xf32>
    %19 = tpu.matmul %17, %18, %cst_11 {dimension_numbers = #tpu.dot_dimension_numbers<[1], [0], [0], [1], [0, 0, 1, 1], [], []>} : vector<32x512xbf16>, vector<512x128xbf16>, vector<32x128xf32> -> vector<32x128xf32>
    %c3 = arith.constant 3 : index
    %c0_12 = arith.constant 0 : index
    %20 = vector.load %arg2[%c3, %c0_12] : memref<16x512xf32, #tpu.memory_space<vmem>>, vector<1x128xf32>
    %21 = vector.broadcast %20 : vector<1x128xf32> to vector<32x128xf32>
    %22 = arith.addf %19, %21 : vector<32x128xf32>
    %cst_13 = arith.constant 0.000000e+00 : f32
    %23 = vector.broadcast %cst_13 : f32 to vector<32x128xf32>
    %24 = arith.maximumf %22, %23 : vector<32x128xf32>
    %25 = arith.truncf %24 : vector<32x128xf32> to vector<32x128xbf16>
    %c0_14 = arith.constant 0 : index
    %c0_15 = arith.constant 0 : index
    %c0_16 = arith.constant 0 : index
    %26 = vector.load %arg5[%c0_14, %c0_15, %c0_16] : memref<5x128x128xbf16, #tpu.memory_space<vmem>>, vector<1x128x128xbf16>
    %27 = vector.shape_cast %26 : vector<1x128x128xbf16> to vector<128x128xbf16>
    %cst_17 = arith.constant dense<0.000000e+00> : vector<32x128xf32>
    %28 = tpu.matmul %25, %27, %cst_17 {dimension_numbers = #tpu.dot_dimension_numbers<[1], [0], [0], [1], [0, 0, 1, 1], [], []>} : vector<32x128xbf16>, vector<128x128xbf16>, vector<32x128xf32> -> vector<32x128xf32>
    %c4 = arith.constant 4 : index
    %c0_18 = arith.constant 0 : index
    %29 = vector.load %arg2[%c4, %c0_18] : memref<16x512xf32, #tpu.memory_space<vmem>>, vector<1x128xf32>
    %30 = vector.broadcast %29 : vector<1x128xf32> to vector<32x128xf32>
    %31 = arith.addf %28, %30 : vector<32x128xf32>
    %cst_19 = arith.constant 0.000000e+00 : f32
    %32 = vector.broadcast %cst_19 : f32 to vector<32x128xf32>
    %33 = arith.maximumf %31, %32 : vector<32x128xf32>
    %34 = arith.truncf %33 : vector<32x128xf32> to vector<32x128xbf16>
    %c1_20 = arith.constant 1 : index
    %c0_21 = arith.constant 0 : index
    %c0_22 = arith.constant 0 : index
    %35 = vector.load %arg5[%c1_20, %c0_21, %c0_22] : memref<5x128x128xbf16, #tpu.memory_space<vmem>>, vector<1x128x128xbf16>
    %36 = vector.shape_cast %35 : vector<1x128x128xbf16> to vector<128x128xbf16>
    %cst_23 = arith.constant dense<0.000000e+00> : vector<32x128xf32>
    %37 = tpu.matmul %34, %36, %cst_23 {dimension_numbers = #tpu.dot_dimension_numbers<[1], [0], [0], [1], [0, 0, 1, 1], [], []>} : vector<32x128xbf16>, vector<128x128xbf16>, vector<32x128xf32> -> vector<32x128xf32>
    %c5 = arith.constant 5 : index
    %c0_24 = arith.constant 0 : index
    %38 = vector.load %arg2[%c5, %c0_24] : memref<16x512xf32, #tpu.memory_space<vmem>>, vector<1x128xf32>
    %39 = vector.broadcast %38 : vector<1x128xf32> to vector<32x128xf32>
    %40 = arith.addf %37, %39 : vector<32x128xf32>
    %cst_25 = arith.constant 0.000000e+00 : f32
    %41 = vector.broadcast %cst_25 : f32 to vector<32x128xf32>
    %42 = arith.maximumf %40, %41 : vector<32x128xf32>
    %43 = arith.truncf %42 : vector<32x128xf32> to vector<32x128xbf16>
    %c2_26 = arith.constant 2 : index
    %c0_27 = arith.constant 0 : index
    %c0_28 = arith.constant 0 : index
    %44 = vector.load %arg5[%c2_26, %c0_27, %c0_28] : memref<5x128x128xbf16, #tpu.memory_space<vmem>>, vector<1x128x128xbf16>
    %45 = vector.shape_cast %44 : vector<1x128x128xbf16> to vector<128x128xbf16>
    %cst_29 = arith.constant dense<0.000000e+00> : vector<32x128xf32>
    %46 = tpu.matmul %43, %45, %cst_29 {dimension_numbers = #tpu.dot_dimension_numbers<[1], [0], [0], [1], [0, 0, 1, 1], [], []>} : vector<32x128xbf16>, vector<128x128xbf16>, vector<32x128xf32> -> vector<32x128xf32>
    %c6 = arith.constant 6 : index
    %c0_30 = arith.constant 0 : index
    %47 = vector.load %arg2[%c6, %c0_30] : memref<16x512xf32, #tpu.memory_space<vmem>>, vector<1x128xf32>
    %48 = vector.broadcast %47 : vector<1x128xf32> to vector<32x128xf32>
    %49 = arith.addf %46, %48 : vector<32x128xf32>
    %cst_31 = arith.constant 0.000000e+00 : f32
    %50 = vector.broadcast %cst_31 : f32 to vector<32x128xf32>
    %51 = arith.maximumf %49, %50 : vector<32x128xf32>
    %52 = arith.truncf %51 : vector<32x128xf32> to vector<32x128xbf16>
    %c3_32 = arith.constant 3 : index
    %c0_33 = arith.constant 0 : index
    %c0_34 = arith.constant 0 : index
    %53 = vector.load %arg5[%c3_32, %c0_33, %c0_34] : memref<5x128x128xbf16, #tpu.memory_space<vmem>>, vector<1x128x128xbf16>
    %54 = vector.shape_cast %53 : vector<1x128x128xbf16> to vector<128x128xbf16>
    %cst_35 = arith.constant dense<0.000000e+00> : vector<32x128xf32>
    %55 = tpu.matmul %52, %54, %cst_35 {dimension_numbers = #tpu.dot_dimension_numbers<[1], [0], [0], [1], [0, 0, 1, 1], [], []>} : vector<32x128xbf16>, vector<128x128xbf16>, vector<32x128xf32> -> vector<32x128xf32>
    %c7 = arith.constant 7 : index
    %c0_36 = arith.constant 0 : index
    %56 = vector.load %arg2[%c7, %c0_36] : memref<16x512xf32, #tpu.memory_space<vmem>>, vector<1x128xf32>
    %57 = vector.broadcast %56 : vector<1x128xf32> to vector<32x128xf32>
    %58 = arith.addf %55, %57 : vector<32x128xf32>
    %c9 = arith.constant 9 : index
    %c0_37 = arith.constant 0 : index
    %59 = vector.load %arg2[%c9, %c0_37] : memref<16x512xf32, #tpu.memory_space<vmem>>, vector<1x1xf32>
    %cst_38 = arith.constant 0.000000e+00 : f32
    %60 = vector.broadcast %cst_38 : f32 to vector<32x128xf32>
    %61 = arith.cmpf ogt, %58, %60 : vector<32x128xf32>
    %62 = vector.broadcast %59 : vector<1x1xf32> to vector<32x128xf32>
    %63 = arith.mulf %62, %58 : vector<32x128xf32>
    %64 = arith.select %61, %58, %63 : vector<32x128xi1>, vector<32x128xf32>
    %65 = arith.truncf %64 : vector<32x128xf32> to vector<32x128xbf16>
    %c4_39 = arith.constant 4 : index
    %c0_40 = arith.constant 0 : index
    %c0_41 = arith.constant 0 : index
    %66 = vector.load %arg5[%c4_39, %c0_40, %c0_41] : memref<5x128x128xbf16, #tpu.memory_space<vmem>>, vector<1x128x128xbf16>
    %67 = vector.shape_cast %66 : vector<1x128x128xbf16> to vector<128x128xbf16>
    %cst_42 = arith.constant dense<0.000000e+00> : vector<32x128xf32>
    %68 = tpu.matmul %65, %67, %cst_42 {dimension_numbers = #tpu.dot_dimension_numbers<[1], [0], [0], [1], [0, 0, 1, 1], [], []>} : vector<32x128xbf16>, vector<128x128xbf16>, vector<32x128xf32> -> vector<32x128xf32>
    %c8 = arith.constant 8 : index
    %c0_43 = arith.constant 0 : index
    %69 = vector.load %arg2[%c8, %c0_43] : memref<16x512xf32, #tpu.memory_space<vmem>>, vector<1x128xf32>
    %70 = vector.broadcast %69 : vector<1x128xf32> to vector<32x128xf32>
    %71 = arith.addf %68, %70 : vector<32x128xf32>
    %cst_44 = arith.constant dense<0xFF800000> : vector<32xf32>
    %72 = vector.multi_reduction <maximumf>, %71, %cst_44 [1] : vector<32x128xf32> to vector<32xf32>
    %73 = vector.shape_cast %72 : vector<32xf32> to vector<32x1xf32>
    %74 = vector.broadcast %73 : vector<32x1xf32> to vector<32x128xf32>
    %75 = arith.subf %71, %74 : vector<32x128xf32>
    %76 = math.exp %75 : vector<32x128xf32>
    %cst_45 = arith.constant dense<0.000000e+00> : vector<32xf32>
    %77 = vector.multi_reduction <add>, %76, %cst_45 [1] : vector<32x128xf32> to vector<32xf32>
    %78 = vector.shape_cast %77 : vector<32xf32> to vector<32x1xf32>
    %79 = math.log %78 : vector<32x1xf32>
    %80 = vector.broadcast %79 : vector<32x1xf32> to vector<32x128xf32>
    %81 = arith.subf %75, %80 : vector<32x128xf32>
    %c0_46 = arith.constant 0 : index
    %c0_47 = arith.constant 0 : index
    %82 = vector.load %arg6[%c0_46, %c0_47] : memref<32x128xf32, #tpu.memory_space<vmem>>, vector<32x128xf32>
    tpu.vector_store %arg6[%c0_46, %c0_47], %81 {strides = array<i32>} : memref<32x128xf32, #tpu.memory_space<vmem>>, vector<32x128xf32>,
    return
  }
  func.func @transform_0(%arg0: i32) -> (i32, i32) {
    %c0_i32 = arith.constant 0 : i32
    %c0_i32_0 = arith.constant 0 : i32
    return %arg0, %c0_i32 : i32, i32
  }
  func.func @transform_1(%arg0: i32) -> (i32, i32) {
    %c0_i32 = arith.constant 0 : i32
    %c0_i32_0 = arith.constant 0 : i32
    %c0_i32_1 = arith.constant 0 : i32
    return %c0_i32, %c0_i32_0 : i32, i32
  }
  func.func @transform_2(%arg0: i32) -> (i32, i32) {
    %c0_i32 = arith.constant 0 : i32
    %c0_i32_0 = arith.constant 0 : i32
    %c0_i32_1 = arith.constant 0 : i32
    return %c0_i32, %c0_i32_0 : i32, i32
  }
  func.func @transform_3(%arg0: i32) -> (i32, i32) {
    %c0_i32 = arith.constant 0 : i32
    %c0_i32_0 = arith.constant 0 : i32
    %c0_i32_1 = arith.constant 0 : i32
    return %c0_i32, %c0_i32_0 : i32, i32
  }
  func.func @transform_4(%arg0: i32) -> (i32, i32, i32) {
    %c0_i32 = arith.constant 0 : i32
    %c0_i32_0 = arith.constant 0 : i32
    %c0_i32_1 = arith.constant 0 : i32
    %c0_i32_2 = arith.constant 0 : i32
    return %c0_i32, %c0_i32_0, %c0_i32_1 : i32, i32, i32
  }
  func.func @transform_5(%arg0: i32) -> (i32, i32) {
    %c0_i32 = arith.constant 0 : i32
    %c0_i32_0 = arith.constant 0 : i32
    return %arg0, %c0_i32 : i32, i32
  }
}

</mosaic_0001>

<bundles_post_ra>
// kernel: tpu_custom_call.1
= control target key start
LH: loop header
LB: loop body
LE: loop exit
PB: predicated region body
PF: predicated region fallthrough
CT: control target
= control target key end

     0   :  { %10 = vsyncpa [#allocation3], 0  ;;  %s3236_s0 = inlined_call_operand.hbm [shape: f32[64,256], index: 0, kind: input, shape index: {}]   ;;  %s3237_s1 = inlined_call_operand.hbm [shape: f32[16,512], index: 1, kind: input, shape index: {}]   ;;  %s3238_s2 = inlined_call_operand.hbm [shape: bf16[256,512], index: 2, kind: input, shape index: {}]   ;;  %s3239_s3 = inlined_call_operand.hbm [shape: bf16[512,128], index: 3, kind: input, shape index: {}]   ;;  %s3240_s4 = inlined_call_operand.hbm [shape: bf16[5,128,128], index: 4, kind: input, shape index: {}]   ;;  %s3241_s5 = inlined_call_operand.hbm [shape: f32[64,128], index: 5, kind: output, shape index: {}]  }
   0x1   :  { %12 = vsyncpa [#allocation3 + $0x1], 0 }
   0x2   :  { %13 = vsyncpa [#allocation6], 0 }
   0x3   :  { %14 = vsyncpa [#allocation9], 0 }
   0x4   :  { %15 = vsyncpa [#allocation4], 0 }
   0x5   :  { %17 = vsyncpa [#allocation4 + $0x1], 0  ;;  %s3002_s18 = smov 0   ;;  %s3004_s19 = smov 0  }
   0x6   :  { %s3006_s20 = smov 0   ;;  %s3008_s21 = smov 0  }
   0x7 LB: > { %s3023_s22 = sadd.s32 4294967295, %s2957_s21   ;;  %s1906_s23 = sadd.s32 4294967294, %s2957_s21   ;;  %s2957_s21 = sphi %s3008_s21, %s3254_s21   ;;  %s2953_s20 = sphi %s3006_s20, %s3253_s20   ;;  %s2949_s19 = sphi %s3004_s19, %s3252_s19   ;;  %s2945_s18 = sphi %s3002_s18, %s3251_s18  }
   0x8   : > { %p43_p0 = scmp.ne.s32.totalorder %s2949_s19, %s2945_s18  ;;  %p44_p1 = scmp.eq.s32.totalorder %s3023_s22, 0 }
   0x9   : > { %p151_p2 = scmp.eq.s32.totalorder %s3023_s22, 1  ;;  %p157_p3 = scmp.eq.s32.totalorder %s1906_s23, 1 }
   0xa   : > { %p3032_p4 = por %p44_p1, %p43_p0  ;;  %p1907_p5 = scmp.ge.s32.totalorder %s2957_s21, 1 }
   0xb   : > { %p3037_p6 = por %p157_p3, %p43_p0  ;;  %p164_p7 = scmp.lt.s32.totalorder %s2957_s21, 3 }
   0xc   : > { %s175_s28 = sshll.u32 %s3237_s1, 4  ;;  %s2959_s30 = smov [#allocation5]   ;;  %s176_s28 = int_to_ptr.hbm [resolvable:$true] %s175_s28 }
   0xd   : > { %p3045_p8 = pnand %p1907_p5, %p164_p7  ;;  %s177_s6 = sshll.u32 %s2959_s30, 4  ;;  %s178_s6 = int_to_ptr.vmem [resolvable:$true] %s177_s6 }
   0xe   : > { %s203_s10 = sshll.u32 %s3239_s3, 4  ;;  %s2960_s11 = smov 512   ;;  %s204_s10 = int_to_ptr.hbm [resolvable:$true] %s203_s10 }
   0xf   : > { %p2640_p9 = pneg %p3045_p8  ;;  %s2961_s12 = smov 32  }
  0x10   : > { %s2962_s13 = smov [#allocation8]   ;;  %s2963_s15 = smov 64  }
  0x11   : > { %p3053_p10 = pnand %p2640_p9, %p44_p1  ;;  %s205_s14 = sshll.u32 %s2962_s13, 4  ;;  %s206_s14 = int_to_ptr.vmem [resolvable:$true] %s205_s14 }
  0x12   : > { %s2964_s16 = smov 4   ;;  %s189_s26 = sshll.u32 %s3238_s2, 4  ;;  %s190_s26 = int_to_ptr.hbm [resolvable:$true] %s189_s26 }
  0x13   : > { %2643 = dma.hbm_to_vmem [thread:$0]  (!%p3053_p10), %s176_s28, 1024, %s178_s6, [#allocation6], %s2960_s11, %s2960_s11, %s2961_s12  }
  0x14   : > { %2649 = dma.hbm_to_vmem [thread:$0]  (!%p3053_p10), %s204_s10, 4096, %s206_s14, [#allocation9], %s2963_s15, %s2963_s15, %s2964_s16  }
  0x15   : > { %s2965_s27 = smov [#allocation7]   ;;  %s217_s8 = sshll.u32 %s3240_s4, 4  ;;  %s218_s8 = int_to_ptr.hbm [resolvable:$true] %s217_s8 }
  0x16   : > { %s191_s28 = sshll.u32 %s2965_s27, 4  ;;  %s3242_s9 = smov 256   ;;  %s192_s28 = int_to_ptr.vmem [resolvable:$true] %s191_s28 }
  0x17   : > { %s2967_s10 = smov 16   ;;  %s2968_s11 = smov [#allocation10]  }
  0x18   : > { %2646 = dma.hbm_to_vmem [thread:$0]  (!%p3053_p10), %s190_s26, 8192, %s192_s28, [#allocation6], %s3242_s9, %s3242_s9, %s2967_s10  }
  0x19   : > { %s219_s12 = sshll.u32 %s2968_s11, 4  ;;  %s3079_s13 = sadd.s32 1, %s2957_s21   ;;  %s220_s12 = int_to_ptr.vmem [resolvable:$true] %s219_s12 }
  0x1a   : > { %2652 = dma.hbm_to_vmem [thread:$0]  (!%p3053_p10), %s218_s8, 5120, %s220_s12, [#allocation9], %s2963_s15, %s2963_s15, %s2964_s16  }
  0x1b   : > { %s30_s14 = sadd.s32 1, %s2953_s20  ;;  %s27_s17 = ssub.s32 %s2957_s21, %s3079_s13 }
  0x1c   : > { %p37_p12 = scmp.ne.s32.totalorder %s2953_s20, %s2949_s19  ;;  %p28_p13 = scmp.eq.s32.totalorder %s27_s17, 0 }
  0x1d   : > { %p38_p0 = scmp.eq.s32.totalorder %s2957_s21, 0  ;;  %p2665_p5 = scmp.lt.s32.totalorder %s2957_s21, 2 }
  0x1e   : > { %p3089_p3 = por %p151_p2, %p37_p12  ;;  %s233_s27 = sand.u32 1, %s2953_s20  }
  0x1f   : > { %s3095_s26 = scalar_select %p28_p13, %s2953_s20, %s30_s14  }
  0x20   : > { %p39_p7 = por %p38_p0, %p37_p12  ;;  %s1913_s7 = sshll.u32 %s233_s27, 6 }
  0x21   : > { %s2474_s15 = sshll.u32 %s2957_s21, 6  ;;  %s237_s6 = scalar_lea.vmem [#allocation2], %s1913_s7 }
  0x22   : > { %s243_s30 = scalar_lea.hbm %s3236_s0, %s2474_s15  ;;  %s246_s8 = sshll.u32 %s237_s6, 4  ;;  %s247_s8 = int_to_ptr.vmem [resolvable:$true] %s246_s8 }
  0x23   : > { %s244_s11 = sshll.u32 %s243_s30, 4  ;;  %p3102_p2 = pnand %p2665_p5, %p39_p7  ;;  %s245_s11 = int_to_ptr.hbm [resolvable:$true] %s244_s11 }
  0x24   : > { %s234_s14 = scalar_lea.sflag [#allocation3], %s233_s27  ;;  %s2853_s17 = sshra.s32 %s245_s11, 4  ;;  %s2854_s17 = int_to_ptr.hbm [resolvable:$true] %s2853_s17 }
  0x25   : > { %s2855_s9 = scalar_lea.hbm %s2854_s17, 64  ;;  %p2857_p10 = pneg %p3102_p2 }
  0x26   : > { %p2856_p9 = scmp.ne.s32.totalorder %s2854_s17, %s2855_s9  ;;  %s2860_s16 = scalar_lea.hbm %s3236_s0, 128 }
  0x27   : > { %p2861_p0 = scmp.lt.s32.totalorder %s2854_s17, %s3236_s0  ;;  %p2862_p5 = scmp.lt.s32.totalorder %s2860_s16, %s2855_s9 }
  0x28   : > { %p2858_p12 = pnand %p2857_p10, %p2856_p9 }
  0x29   : > { %p2863_p7 = por %p2862_p5, %p2861_p0 }
  0x2a   : > { %p2859_p13 = pneg %p2858_p12 }
  0x2c   : > { %p2864_p11 = pnand %p2863_p7, %p2859_p13 }
  0x2e   : > { %2867 = shalt.err (!%p2864_p11)
}
  0x2f   : > { %s3249_s27 = smov 256   ;;  %258 = sbr.rel (%p3045_p8) target bundleno = 1402 (0x57a), region = 40 }
  0x30   : > { %2656 = dma.hbm_to_vmem [thread:$0]  (!%p3102_p2), %s245_s11, 1024, %s247_s8, %s234_s14, %s3249_s27, %s3249_s27, %s2967_s10  }
  0x31   : > { %s3122_s6 = sand.u32 (!%p3045_p8), 1, %s2949_s19  }
  0x32   : > { %s1918_s17 = sshll.u32 (!%p3045_p8), %s3122_s6, 6  ;;  %s261_s9 = scalar_lea.sflag (!%p3045_p8), [#allocation3], %s3122_s6 }
  0x33   : > { %s3126_s15 = scalar_lea.vmem (!%p3045_p8), [#allocation2], %s1918_s17 }
  0x34   : > { %2928 = dma.done.wait (%p3032_p4), %s261_s9, 1024  }
  0x35   : > { %2930 = vsyncadd (%p3032_p4), %s261_s9, 4294966272 }
  0x36   : > { %2932 = dma.done.wait (%p44_p1), [#allocation6], 9216  }
  0x37   : > { %2934 = vsyncadd (%p44_p1), [#allocation6], 4294958080 }
  0x38   : > { %2936 = dma.done.wait (%p44_p1), [#allocation9], 9216  }
  0x39   : > { %2938 = vsyncadd (%p44_p1), [#allocation9], 4294958080  ;;  %v2038_v0 = vld [vmem:[#allocation7 + $0xe0] sm:$0xf]  ;;  %v2505_v1 = vld [vmem:[#allocation7 + $0xec] sm:$0xf0] }
  0x3a   : > { %v2166_v2 = vld [vmem:[#allocation7 + $0x1e0] sm:$0xf]  ;;  %v2039_v3 = vor.u32 %v2505_v1, %v2038_v0  ;;  %v2537_v4 = vld [vmem:[#allocation7 + $0x1ec] sm:$0xf0]  ;;  %v2503_v5 = vld [vmem:[#allocation7 + $0xe4] sm:$0xf] }
  0x3b   : > { %v2040_v6 = vld [vmem:[#allocation7 + $0xf0] sm:$0xf0]  ;;  %v2167_v7 = vor.u32 %v2537_v4, %v2166_v2  ;;  %v2535_v9 = vld [vmem:[#allocation7 + $0x1e4] sm:$0xf]  ;;  %v2022_v11 = vld [vmem:[#allocation7 + $0xc0] sm:$0xf] }
  0x3c   : > { %v2043_v8 = vor.u32 %v2503_v5, %v2040_v6  ;;  %v2168_v10 = vld [vmem:[#allocation7 + $0x1f0] sm:$0xf0]  ;;  %758 = vmatpush.bf16.msra.mxu0 %v2039_v3  ;;  %v2501_v13 = vld [vmem:[#allocation7 + $0xcc] sm:$0xf0]  ;;  %v2150_v14 = vld [vmem:[#allocation7 + $0x1c0] sm:$0xf] }
  0x3d   : > { %v2171_v12 = vor.u32 %v2535_v9, %v2168_v10  ;;  %v2533_v15 = vld [vmem:[#allocation7 + $0x1cc] sm:$0xf0]  ;;  %777 = vmatpush.bf16.msra.mxu1 %v2167_v7  ;;  %v2023_v16 = vor.u32 %v2501_v13, %v2022_v11  ;;  %v2499_v18 = vld [vmem:[#allocation7 + $0xc4] sm:$0xf]  ;;  %v2024_v19 = vld [vmem:[#allocation7 + $0xd0] sm:$0xf0] }
  0x3e   : > { %796 = vmatpush.bf16.msra.mxu2 %v2043_v8  ;;  %v2151_v17 = vor.u32 %v2533_v15, %v2150_v14  ;;  %v2531_v20 = vld [vmem:[#allocation7 + $0x1c4] sm:$0xf]  ;;  %v2027_v21 = vor.u32 %v2499_v18, %v2024_v19  ;;  %v2152_v22 = vld [vmem:[#allocation7 + $0x1d0] sm:$0xf0]  ;;  %v2006_v23 = vld [vmem:[#allocation7 + $0xa0] sm:$0xf] }
  0x3f   : > { %815 = vmatpush.bf16.msra.mxu3 %v2171_v12  ;;  %v2497_v24 = vld [vmem:[#allocation7 + $0xac] sm:$0xf0]  ;;  %v2155_v25 = vor.u32 %v2531_v20, %v2152_v22  ;;  %v2134_v26 = vld [vmem:[#allocation7 + $0x1a0] sm:$0xf]  ;;  %v2495_v28 = vld [vmem:[#allocation7 + $0xa4] sm:$0xf] }
  0x40   : > { %v2529_v27 = vld [vmem:[#allocation7 + $0x1ac] sm:$0xf0]  ;;  %759 = vmatpush.bf16.msra.mxu0 %v2023_v16  ;;  %v2007_v29 = vor.u32 %v2497_v24, %v2006_v23  ;;  %v2008_v30 = vld [vmem:[#allocation7 + $0xb0] sm:$0xf0]  ;;  %v2527_v31 = vld [vmem:[#allocation7 + $0x1a4] sm:$0xf] }
  0x41   : > { %v2136_v32 = vld [vmem:[#allocation7 + $0x1b0] sm:$0xf0]  ;;  %778 = vmatpush.bf16.msra.mxu1 %v2151_v17  ;;  %v2135_v33 = vor.u32 %v2529_v27, %v2134_v26  ;;  %v2011_v34 = vor.u32 %v2495_v28, %v2008_v30  ;;  %v1990_v35 = vld [vmem:[#allocation7 + $0x80] sm:$0xf]  ;;  %v2493_v36 = vld [vmem:[#allocation7 + $0x8c] sm:$0xf0] }
  0x42   : > { %797 = vmatpush.bf16.msra.mxu2 %v2027_v21  ;;  %v2118_v37 = vld [vmem:[#allocation7 + $0x180] sm:$0xf]  ;;  %v2139_v38 = vor.u32 %v2527_v31, %v2136_v32  ;;  %v2525_v39 = vld [vmem:[#allocation7 + $0x18c] sm:$0xf0]  ;;  %v2491_v40 = vld [vmem:[#allocation7 + $0x84] sm:$0xf]  ;;  %v1991_v44 = vor.u32 %v2493_v36, %v1990_v35 }
  0x43   : > { %816 = vmatpush.bf16.msra.mxu3 %v2155_v25  ;;  %v1992_v41 = vld [vmem:[#allocation7 + $0x90] sm:$0xf0]  ;;  %v2523_v42 = vld [vmem:[#allocation7 + $0x184] sm:$0xf]  ;;  %v2119_v45 = vor.u32 %v2525_v39, %v2118_v37  ;;  %v1974_v47 = vld [vmem:[#allocation7 + $0x60] sm:$0xf] }
  0x44   : > { %v2120_v43 = vld [vmem:[#allocation7 + $0x190] sm:$0xf0]  ;;  %760 = vmatpush.bf16.msra.mxu0 %v2007_v29  ;;  %v1995_v46 = vor.u32 %v2491_v40, %v1992_v41  ;;  %v2489_v48 = vld [vmem:[#allocation7 + $0x6c] sm:$0xf0]  ;;  %v2102_v49 = vld [vmem:[#allocation7 + $0x160] sm:$0xf] }
  0x45   : > { %779 = vmatpush.bf16.msra.mxu1 %v2135_v33  ;;  %v2123_v50 = vor.u32 %v2523_v42, %v2120_v43  ;;  %v2521_v51 = vld [vmem:[#allocation7 + $0x16c] sm:$0xf0]  ;;  %v2487_v52 = vld [vmem:[#allocation7 + $0x64] sm:$0xf]  ;;  %v1976_v53 = vld [vmem:[#allocation7 + $0x70] sm:$0xf0]  ;;  %v1975_v56 = vor.u32 %v2489_v48, %v1974_v47 }
  0x46   : > { %798 = vmatpush.bf16.msra.mxu2 %v2011_v34  ;;  %v2519_v54 = vld [vmem:[#allocation7 + $0x164] sm:$0xf]  ;;  %v2104_v55 = vld [vmem:[#allocation7 + $0x170] sm:$0xf0]  ;;  %v1958_v57 = vld [vmem:[#allocation7 + $0x40] sm:$0xf]  ;;  %v2103_v58 = vor.u32 %v2521_v51, %v2102_v49  ;;  %v1979_v59 = vor.u32 %v2487_v52, %v1976_v53 }
  0x47   : > { %817 = vmatpush.bf16.msra.mxu3 %v2139_v38  ;;  %v2485_v60 = vld [vmem:[#allocation7 + $0x4c] sm:$0xf0]  ;;  %v2086_v61 = vld [vmem:[#allocation7 + $0x140] sm:$0xf]  ;;  %v2107_v63 = vor.u32 %v2519_v54, %v2104_v55  ;;  %v2483_v0 = vld [vmem:[#allocation7 + $0x44] sm:$0xf] }
  0x48   : > { %761 = vmatpush.bf16.msra.mxu0 %v1991_v44  ;;  %v2517_v62 = vld [vmem:[#allocation7 + $0x14c] sm:$0xf0]  ;;  %v1960_v1 = vld [vmem:[#allocation7 + $0x50] sm:$0xf0]  ;;  %v2515_v2 = vld [vmem:[#allocation7 + $0x144] sm:$0xf]  ;;  %v1959_v6 = vor.u32 %v2485_v60, %v1958_v57 }
  0x49   : > { %780 = vmatpush.bf16.msra.mxu1 %v2119_v45  ;;  %v2088_v3 = vld [vmem:[#allocation7 + $0x150] sm:$0xf0]  ;;  %v1942_v4 = vld [vmem:[#allocation7 + $0x20] sm:$0xf]  ;;  %v2481_v5 = vld [vmem:[#allocation7 + $0x2c] sm:$0xf0]  ;;  %v2087_v10 = vor.u32 %v2517_v62, %v2086_v61  ;;  %v1963_v11 = vor.u32 %v2483_v0, %v1960_v1 }
  0x4a   : > { %799 = vmatpush.bf16.msra.mxu2 %v1995_v46  ;;  %v2070_v7 = vld [vmem:[#allocation7 + $0x120] sm:$0xf]  ;;  %v2513_v8 = vld [vmem:[#allocation7 + $0x12c] sm:$0xf0]  ;;  %v2479_v9 = vld [vmem:[#allocation7 + $0x24] sm:$0xf]  ;;  %v2091_v15 = vor.u32 %v2515_v2, %v2088_v3  ;;  %v1943_v22 = vor.u32 %v2481_v5, %v1942_v4 }
  0x4b   : > { %818 = vmatpush.bf16.msra.mxu3 %v2123_v50  ;;  %v1944_v12 = vld [vmem:[#allocation7 + $0x30] sm:$0xf0]  ;;  %v2511_v13 = vld [vmem:[#allocation7 + $0x124] sm:$0xf]  ;;  %v1926_v16 = vld [vmem:[#allocation7] sm:$0xf]  ;;  %v2071_v31 = vor.u32 %v2513_v8, %v2070_v7 }
  0x4c   : > { %762 = vmatpush.bf16.msra.mxu0 %v1975_v56  ;;  %v2072_v14 = vld [vmem:[#allocation7 + $0x130] sm:$0xf0]  ;;  %v2477_v17 = vld [vmem:[#allocation7 + $0xc] sm:$0xf0]  ;;  %v2054_v18 = vld [vmem:[#allocation7 + $0x100] sm:$0xf]  ;;  %v1947_v32 = vor.u32 %v2479_v9, %v1944_v12 }
  0x4d   : > { %781 = vmatpush.bf16.msra.mxu1 %v2103_v58  ;;  %v2509_v19 = vld [vmem:[#allocation7 + $0x10c] sm:$0xf0]  ;;  %v314_v20 = vld [vmem:[%s3126_s15] sm:$0xff]  ;;  %v315_v27 = vld [vmem:[%s3126_s15 + $0x8] sm:$0xff]  ;;  %v2075_v33 = vor.u32 %v2511_v13, %v2072_v14  ;;  %v1927_v44 = vor.u32 %v2477_v17, %v1926_v16  ;;  %s1923_s24 = sshll.u32 %s3122_s6, 5  ;;  %s2611_s10 = sshll.u32 %s3023_s22, 5 }
  0x4e   : > { %800 = vmatpush.bf16.msra.mxu2 %v1979_v59  ;;  %v316_v21 = vld [vmem:[%s3126_s15 + $0x10] sm:$0xff]  ;;  %v322_v23 = vld [vmem:[#allocation5] ss:$8 sm:$0x3]  ;;  %v317_v28 = vld [vmem:[%s3126_s15 + $0x18] sm:$0xff]  ;;  %v2055_v45 = vor.u32 %v2509_v19, %v2054_v18  ;;  %s311_s29 = scalar_lea.vmem [#allocation11], %s1923_s24  ;;  %s1791_s12 = scalar_lea.hbm %s3241_s5, %s2611_s10 }
  0x4f   : > { %819 = vmatpush.bf16.msra.mxu3 %v2107_v63  ;;  %v337_v24 = vld [vmem:[#allocation5 + $0x1] ss:$8 sm:$0x3]  ;;  %v3142_v25 = vperm.slane %v322_v23, 0  ;;  %v3148_v29 = vperm.slane %v322_v23, 1  ;;  %s1792_s14 = sshll.u32 %s311_s29, 4  ;;  %s1793_s14 = int_to_ptr.vmem [resolvable:$true] %s1792_s14 }
  0x50   : > { %763 = vmatpush.bf16.msra.mxu0 %v1959_v6  ;;  %v3144_v26 = vperm.slane %v337_v24, 0  ;;  %v3150_v30 = vperm.slane %v337_v24, 1  ;;  %v2475_v34 = vld [vmem:[#allocation7 + $0x4] sm:$0xf]  ;;  %v1928_v35 = vld [vmem:[#allocation7 + $0x10] sm:$0xf0] }
  0x51   : > { %782 = vmatpush.bf16.msra.mxu1 %v2087_v10  ;;  %v2507_v36 = vld [vmem:[#allocation7 + $0x104] sm:$0xf]  ;;  %v2056_v37 = vld [vmem:[#allocation7 + $0x110] sm:$0xf0]  ;;  %v328_v38 = vmul.f32 %v3142_v25, %v314_v20  ;;  %v330_v39 = vmul.f32 %v3142_v25, %v316_v21  ;;  %v329_v40 = vmul.f32 %v3148_v29, %v315_v27  ;;  %v331_v41 = vmul.f32 %v3148_v29, %v317_v28  ;;  %v2504_v42 = vld [vmem:[#allocation7 + $0xec] sm:$0xf] }
  0x52   : > { %801 = vmatpush.bf16.msra.mxu2 %v1963_v11  ;;  %v2048_v43 = vld [vmem:[#allocation7 + $0xf8] sm:$0xf0]  ;;  %v2174_v50 = vld [vmem:[#allocation7 + $0x1e8] sm:$0xf]  ;;  %v2538_v51 = vld [vmem:[#allocation7 + $0x1f4] sm:$0xf0]  ;;  %v1931_v52 = vor.u32 %v2475_v34, %v1928_v35  ;;  %v2059_v53 = vor.u32 %v2507_v36, %v2056_v37 }
  0x53   : > { %820 = vmatpush.bf16.msra.mxu3 %v2091_v15  ;;  %v343_v46 = vadd.f32 %v3144_v26, %v328_v38  ;;  %v345_v47 = vadd.f32 %v3144_v26, %v330_v39  ;;  %v344_v48 = vadd.f32 %v3150_v30, %v329_v40  ;;  %v346_v49 = vadd.f32 %v3150_v30, %v331_v41  ;;  %v2046_v55 = vld [vmem:[#allocation7 + $0xe8] sm:$0xf]  ;;  %v2506_v56 = vld [vmem:[#allocation7 + $0xf4] sm:$0xf0]  ;;  %v2536_v61 = vld [vmem:[#allocation7 + $0x1ec] sm:$0xf] }
  0x54   : > { %764 = vmatpush.bf16.msra.mxu0 %v1943_v22  ;;  %v2051_v54 = vor.u32 %v2504_v42, %v2048_v43  ;;  %v2175_v62 = vor.u32 %v2538_v51, %v2174_v50  ;;  %v2176_v63 = vld [vmem:[#allocation7 + $0x1f8] sm:$0xf0]  ;;  %v2500_v0 = vld [vmem:[#allocation7 + $0xcc] sm:$0xf]  ;;  %v2158_v4 = vld [vmem:[#allocation7 + $0x1c8] sm:$0xf]  ;;  %v2047_v6 = vor.u32 %v2506_v56, %v2046_v55 }
  0x55   : > { %783 = vmatpush.bf16.msra.mxu1 %v2071_v31  ;;  %v351_v57 = vmax.f32 %v343_v46, 0.0  ;;  %v353_v58 = vmax.f32 %v345_v47, 0.0  ;;  %v352_v59 = vmax.f32 %v344_v48, 0.0  ;;  %v354_v60 = vmax.f32 %v346_v49, 0.0  ;;  %v2032_v1 = vld [vmem:[#allocation7 + $0xd8] sm:$0xf0] }
  0x56   : > { %802 = vmatpush.bf16.msra.mxu2 %v1947_v32  ;;  %v2534_v5 = vld [vmem:[#allocation7 + $0x1d4] sm:$0xf0]  ;;  %v2030_v7 = vld [vmem:[#allocation7 + $0xc8] sm:$0xf]  ;;  %v2179_v9 = vor.u32 %v2536_v61, %v2176_v63  ;;  %v2035_v10 = vor.u32 %v2500_v0, %v2032_v1  ;;  %v2532_v11 = vld [vmem:[#allocation7 + $0x1cc] sm:$0xf] }
  0x57   : > { %821 = vmatpush.bf16.msra.mxu3 %v2075_v33  ;;  %v3160_v2 = vpack.c.bf16 %v353_v58, %v351_v57  ;;  %v3162_v3 = vpack.c.bf16 %v354_v60, %v352_v59  ;;  %v2502_v8 = vld [vmem:[#allocation7 + $0xd4] sm:$0xf0]  ;;  %v2160_v12 = vld [vmem:[#allocation7 + $0x1d8] sm:$0xf0]  ;;  %v2159_v13 = vor.u32 %v2534_v5, %v2158_v4  ;;  %v2496_v14 = vld [vmem:[#allocation7 + $0xac] sm:$0xf] }
  0x58   : > { %765 = vmatpush.bf16.msra.mxu0 %v1927_v44  ;;  %v2016_v15 = vld [vmem:[#allocation7 + $0xb8] sm:$0xf0]  ;;  %v2142_v16 = vld [vmem:[#allocation7 + $0x1a8] sm:$0xf]  ;;  %v2031_v17 = vor.u32 %v2502_v8, %v2030_v7  ;;  %v2530_v18 = vld [vmem:[#allocation7 + $0x1b4] sm:$0xf0]  ;;  %v2163_v21 = vor.u32 %v2532_v11, %v2160_v12 }
  0x59   : > { %784 = vmatpush.bf16.msra.mxu1 %v2055_v45  ;;  %v318_v19 = vld [vmem:[%s3126_s15 + $0x20] sm:$0xff]  ;;  %v320_v20 = vld [vmem:[%s3126_s15 + $0x30] sm:$0xff]  ;;  %v319_v24 = vld [vmem:[%s3126_s15 + $0x28] sm:$0xff]  ;;  %v2019_v28 = vor.u32 %v2496_v14, %v2016_v15  ;;  %v2143_v36 = vor.u32 %v2530_v18, %v2142_v16  ;;  %s1794_s7 = sshll.u32 %s1791_s12, 4  ;;  %s1780_s16 = scalar_lea.sflag [#allocation4], %s3122_s6  ;;  %s1795_s7 = int_to_ptr.hbm [resolvable:$true] %s1794_s7 }
  0x5a   : > { %803 = vmatpush.bf16.msra.mxu2 %v1931_v52  ;;  %v332_v22 = vmul.f32 %v3142_v25, %v318_v19  ;;  %v334_v23 = vmul.f32 %v3142_v25, %v320_v20  ;;  %v321_v27 = vld [vmem:[%s3126_s15 + $0x38] sm:$0xff]  ;;  %v2014_v31 = vld [vmem:[#allocation7 + $0xa8] sm:$0xf]  ;;  %v2528_v33 = vld [vmem:[#allocation7 + $0x1ac] sm:$0xf]  ;;  %v333_v34 = vmul.f32 %v3148_v29, %v319_v24  ;;  %s2897_s28 = sshra.s32 %s1795_s7, 4  ;;  %s2898_s28 = int_to_ptr.hbm [resolvable:$true] %s2897_s28 }
  0x5b   : > { %822 = vmatpush.bf16.msra.mxu3 %v2059_v53  ;;  %766 = vmatmul.bf16.vlgmr.msra.gmra.mxu0 %v3160_v2  ;;  %v2498_v32 = vld [vmem:[#allocation7 + $0xb4] sm:$0xf0]  ;;  %v335_v35 = vmul.f32 %v3148_v29, %v321_v27  ;;  %v2144_v37 = vld [vmem:[#allocation7 + $0x1b8] sm:$0xf0]  ;;  %v2492_v38 = vld [vmem:[#allocation7 + $0x8c] sm:$0xf]  ;;  %p2904_p11 = scmp.lt.s32.totalorder %s2898_s28, %s3241_s5 }
  0x5c   : > { %785 = vmatmul.bf16.vlgmr.msra.gmra.mxu1 %v3162_v3  ;;  %834 = vmatpush.bf16.msrb.mxu0 %v2047_v6  ;;  %v2000_v39 = vld [vmem:[#allocation7 + $0x98] sm:$0xf0]  ;;  %v347_v40 = vadd.f32 %v3144_v26, %v332_v22  ;;  %v349_v25 = vadd.f32 %v3144_v26, %v334_v23  ;;  %v2126_v41 = vld [vmem:[#allocation7 + $0x188] sm:$0xf]  ;;  %v2526_v42 = vld [vmem:[#allocation7 + $0x194] sm:$0xf0]  ;;  %v348_v43 = vadd.f32 %v3150_v30, %v333_v34 }
  0x5d   : > { %853 = vmatpush.bf16.msrb.mxu1 %v2175_v62  ;;  %804 = vmatmul.bf16.vlgmr.msra.gmra.mxu2 %v3160_v2  ;;  %v350_v44 = vadd.f32 %v3150_v30, %v335_v35  ;;  %v2015_v45 = vor.u32 %v2498_v32, %v2014_v31  ;;  %v1998_v46 = vld [vmem:[#allocation7 + $0x88] sm:$0xf]  ;;  %v2147_v29 = vor.u32 %v2528_v33, %v2144_v37  ;;  %v2494_v48 = vld [vmem:[#allocation7 + $0x94] sm:$0xf0]  ;;  %v2524_v49 = vld [vmem:[#allocation7 + $0x18c] sm:$0xf] }
  0x5e   : > { %872 = vmatpush.bf16.msrb.mxu2 %v2051_v54  ;;  %823 = vmatmul.bf16.vlgmr.msra.gmra.mxu3 %v3162_v3  ;;  %v2003_v47 = vor.u32 %v2492_v38, %v2000_v39  ;;  %v2128_v50 = vld [vmem:[#allocation7 + $0x198] sm:$0xf0]  ;;  %v2127_v51 = vor.u32 %v2526_v42, %v2126_v41  ;;  %v355_v52 = vmax.f32 %v347_v40, 0.0  ;;  %v357_v26 = vmax.f32 %v349_v25, 0.0  ;;  %v2488_v53 = vld [vmem:[#allocation7 + $0x6c] sm:$0xf] }
  0x5f   : > { %891 = vmatpush.bf16.msrb.mxu3 %v2179_v9  ;;  %v1984_v54 = vld [vmem:[#allocation7 + $0x78] sm:$0xf0]  ;;  %v356_v55 = vmax.f32 %v348_v43, 0.0  ;;  %v358_v56 = vmax.f32 %v350_v44, 0.0  ;;  %v2110_v57 = vld [vmem:[#allocation7 + $0x168] sm:$0xf]  ;;  %v1999_v58 = vor.u32 %v2494_v48, %v1998_v46  ;;  %v2131_v59 = vor.u32 %v2524_v49, %v2128_v50 }
  0x60   : > { %835 = vmatpush.bf16.msrb.mxu0 %v2031_v17  ;;  %v2522_v30 = vld [vmem:[#allocation7 + $0x174] sm:$0xf0]  ;;  %v1987_v60 = vor.u32 %v2488_v53, %v1984_v54  ;;  %v1982_v61 = vld [vmem:[#allocation7 + $0x68] sm:$0xf]  ;;  %v2520_v63 = vld [vmem:[#allocation7 + $0x16c] sm:$0xf]  ;;  %v3180_v0 = vpack.c.bf16 %v357_v26, %v355_v52 }
  0x61   : > { %854 = vmatpush.bf16.msrb.mxu1 %v2159_v13  ;;  %v2490_v62 = vld [vmem:[#allocation7 + $0x74] sm:$0xf0]  ;;  %v2111_v1 = vor.u32 %v2522_v30, %v2110_v57  ;;  %v2112_v4 = vld [vmem:[#allocation7 + $0x178] sm:$0xf0]  ;;  %v2484_v5 = vld [vmem:[#allocation7 + $0x4c] sm:$0xf]  ;;  %v3182_v7 = vpack.c.bf16 %v358_v56, %v356_v55 }
  0x62   : > { %873 = vmatpush.bf16.msrb.mxu2 %v2035_v10  ;;  %v1968_v6 = vld [vmem:[#allocation7 + $0x58] sm:$0xf0]  ;;  %v2094_v8 = vld [vmem:[#allocation7 + $0x148] sm:$0xf]  ;;  %v2518_v9 = vld [vmem:[#allocation7 + $0x154] sm:$0xf0]  ;;  %v1983_v10 = vor.u32 %v2490_v62, %v1982_v61  ;;  %v2115_v11 = vor.u32 %v2520_v63, %v2112_v4 }
  0x63   : > { %892 = vmatpush.bf16.msrb.mxu3 %v2163_v21  ;;  %v1971_v12 = vor.u32 %v2484_v5, %v1968_v6  ;;  %v1966_v13 = vld [vmem:[#allocation7 + $0x48] sm:$0xf]  ;;  %v2486_v14 = vld [vmem:[#allocation7 + $0x54] sm:$0xf0]  ;;  %v2516_v15 = vld [vmem:[#allocation7 + $0x14c] sm:$0xf]  ;;  %v2095_v16 = vor.u32 %v2518_v9, %v2094_v8 }
  0x64   : > { %836 = vmatpush.bf16.msrb.mxu0 %v2015_v45  ;;  %v2096_v17 = vld [vmem:[#allocation7 + $0x158] sm:$0xf0]  ;;  %v2480_v18 = vld [vmem:[#allocation7 + $0x2c] sm:$0xf]  ;;  %v2078_v20 = vld [vmem:[#allocation7 + $0x128] sm:$0xf]  ;;  %v1967_v22 = vor.u32 %v2486_v14, %v1966_v13 }
  0x65   : > { %855 = vmatpush.bf16.msrb.mxu1 %v2143_v36  ;;  %v1952_v19 = vld [vmem:[#allocation7 + $0x38] sm:$0xf0]  ;;  %v2514_v21 = vld [vmem:[#allocation7 + $0x134] sm:$0xf0]  ;;  %v2099_v23 = vor.u32 %v2516_v15, %v2096_v17  ;;  %v1950_v27 = vld [vmem:[#allocation7 + $0x28] sm:$0xf] }
  0x66   : > { %874 = vmatpush.bf16.msrb.mxu2 %v2019_v28  ;;  %v1955_v24 = vor.u32 %v2480_v18, %v1952_v19  ;;  %v2482_v28 = vld [vmem:[#allocation7 + $0x34] sm:$0xf0]  ;;  %v2512_v31 = vld [vmem:[#allocation7 + $0x12c] sm:$0xf]  ;;  %v2079_v32 = vor.u32 %v2514_v21, %v2078_v20  ;;  %v2080_v33 = vld [vmem:[#allocation7 + $0x138] sm:$0xf0] }
  0x67   : > { %893 = vmatpush.bf16.msrb.mxu3 %v2147_v29  ;;  %v2476_v34 = vld [vmem:[#allocation7 + $0xc] sm:$0xf]  ;;  %v1936_v35 = vld [vmem:[#allocation7 + $0x18] sm:$0xf0]  ;;  %v2062_v36 = vld [vmem:[#allocation7 + $0x108] sm:$0xf]  ;;  %v1951_v38 = vor.u32 %v2482_v28, %v1950_v27  ;;  %v2083_v39 = vor.u32 %v2512_v31, %v2080_v33 }
  0x68   : > { %837 = vmatpush.bf16.msrb.mxu0 %v1999_v58  ;;  %v2510_v37 = vld [vmem:[#allocation7 + $0x114] sm:$0xf0]  ;;  %v1939_v40 = vor.u32 %v2476_v34, %v1936_v35  ;;  %v1934_v25 = vld [vmem:[#allocation7 + $0x8] sm:$0xf]  ;;  %v2508_v43 = vld [vmem:[#allocation7 + $0x10c] sm:$0xf] }
  0x69   : > { %856 = vmatpush.bf16.msrb.mxu1 %v2127_v51  ;;  %v2478_v41 = vld [vmem:[#allocation7 + $0x14] sm:$0xf0]  ;;  %v2063_v42 = vor.u32 %v2510_v37, %v2062_v36  ;;  %v2064_v44 = vld [vmem:[#allocation7 + $0x118] sm:$0xf0]  ;;  %v2545_v48 = vld [vmem:[#allocation8 + $0x30] sm:$0xff]  ;;  %s2899_s22 = scalar_lea.hbm %s2898_s28, 32 }
  0x6a   : > { %875 = vmatpush.bf16.msrb.mxu2 %v2003_v47  ;;  %v2554_v45 = vld [vmem:[#allocation8 + $0x78] sm:$0xff]  ;;  %v1935_v46 = vor.u32 %v2478_v41, %v1934_v25  ;;  %v2067_v29 = vor.u32 %v2508_v43, %v2064_v44  ;;  %v2553_v49 = vld [vmem:[#allocation8 + $0x70] sm:$0xff]  ;;  %v2544_v50 = vld [vmem:[#allocation8 + $0x28] sm:$0xff]  ;;  %p2900_p1 = scmp.ne.s32.totalorder %s2898_s28, %s2899_s22  ;;  %s2903_s17 = scalar_lea.hbm %s3241_s5, 64 }
  0x6b   : > { %894 = vmatpush.bf16.msrb.mxu3 %v2131_v59  ;;  %771 = vmatmul.bf16.gmra.mxu0 %v3180_v0  ;;  %v2546_v47 = vld [vmem:[#allocation8 + $0x38] sm:$0xff]  ;;  %v2543_v51 = vld [vmem:[#allocation8 + $0x20] sm:$0xff]  ;;  %v2552_v52 = vld [vmem:[#allocation8 + $0x68] sm:$0xff]  ;;  %p2905_p2 = scmp.lt.s32.totalorder %s2903_s17, %s2899_s22 }
  0x6c   : > { %790 = vmatmul.bf16.gmra.mxu1 %v3182_v7  ;;  %838 = vmatpush.bf16.msrb.mxu0 %v1983_v10  ;;  %v2542_v26 = vld [vmem:[#allocation8 + $0x18] sm:$0xff]  ;;  %v2540_v54 = vld [vmem:[#allocation8 + $0x8] sm:$0xff]  ;;  %v2549_v55 = vld [vmem:[#allocation8 + $0x50] sm:$0xff]  ;;  %p2901_p4 = pnand %p2900_p1, %p3089_p3 }
  0x6d   : > { %857 = vmatpush.bf16.msrb.mxu1 %v2111_v1  ;;  %809 = vmatmul.bf16.gmra.mxu2 %v3180_v0  ;;  %v2550_v53 = vld [vmem:[#allocation8 + $0x58] sm:$0xff]  ;;  %v2539_v56 = vld [vmem:[#allocation8] sm:$0xff]  ;;  %v2548_v57 = vld [vmem:[#allocation8 + $0x48] sm:$0xff]  ;;  %p2906_p9 = por %p2905_p2, %p2904_p11 }
  0x6e   : > { %876 = vmatpush.bf16.msrb.mxu2 %v1987_v60  ;;  %828 = vmatmul.bf16.gmra.mxu3 %v3182_v7  ;;  %v2562_v30 = vld [vmem:[#allocation8 + $0xb8] sm:$0xff]  ;;  %v2547_v58 = vld [vmem:[#allocation8 + $0x40] sm:$0xff]  ;;  %v2561_v59 = vld [vmem:[#allocation8 + $0xb0] sm:$0xff]  ;;  %p2902_p8 = pneg %p2901_p4 }
  0x6f   : > { %895 = vmatpush.bf16.msrb.mxu3 %v2115_v11  ;;  %v2570_v60 = vld [vmem:[#allocation8 + $0xf8] sm:$0xff]  ;;  %v2560_v61 = vld [vmem:[#allocation8 + $0xa8] sm:$0xff]  ;;  %v2569_v62 = vld [vmem:[#allocation8 + $0xf0] sm:$0xff] }
  0x70   : > { %839 = vmatpush.bf16.msrb.mxu0 %v1967_v22  ;;  %v3196_v63 = vld [vmem:[#allocation5 + $0x2] ss:$8 sm:$0xf]  ;;  %p2907_p10 = pnand %p2906_p9, %p2902_p8 }
  0x71   : > { %858 = vmatpush.bf16.msrb.mxu1 %v2095_v16  ;;  %v2568_v4 = vld [vmem:[#allocation8 + $0xe8] sm:$0xff]  ;;  %v430_v5 = vperm.slane %v3196_v63, 0  ;;  %v2567_v8 = vld [vmem:[#allocation8 + $0xe0] sm:$0xff]  ;;  %v2557_v10 = vld [vmem:[#allocation8 + $0x90] sm:$0xff] }
  0x72   : > { %877 = vmatpush.bf16.msrb.mxu2 %v1971_v12  ;;  %v431_v12 = vperm.slane %v3196_v63, 1  ;;  %v2566_v15 = vld [vmem:[#allocation8 + $0xd8] sm:$0xff]  ;;  %v2556_v19 = vld [vmem:[#allocation8 + $0x88] sm:$0xff]  ;;  %v2565_v22 = vld [vmem:[#allocation8 + $0xd0] sm:$0xff] }
  0x73   : > { %896 = vmatpush.bf16.msrb.mxu3 %v2099_v23  ;;  %v2555_v27 = vld [vmem:[#allocation8 + $0x80] sm:$0xff]  ;;  %v2564_v36 = vld [vmem:[#allocation8 + $0xc8] sm:$0xff] }
  0x74   : > { %840 = vmatpush.bf16.msrb.mxu0 %v1951_v38  ;;  %v2563_v25 = vld [vmem:[#allocation8 + $0xc0] sm:$0xff] }
  0x75   : > { %859 = vmatpush.bf16.msrb.mxu1 %v2079_v32 }
  0x76   : > { %878 = vmatpush.bf16.msrb.mxu2 %v1955_v24 }
  0x77   : > { %897 = vmatpush.bf16.msrb.mxu3 %v2083_v39 }
  0x78   : > { %841 = vmatpush.bf16.msrb.mxu0 %v1935_v46 }
  0x79   : > { %860 = vmatpush.bf16.msrb.mxu1 %v2063_v42 }
  0x7a   : > { %879 = vmatpush.bf16.msrb.mxu2 %v1939_v40 }
  0x7b   : > { %898 = vmatpush.bf16.msrb.mxu3 %v2067_v29  ;;  %842 = vmatmul.bf16.vlgmr.msrb.gmra.mxu0 %v3160_v2 }
  0x7c   : > { %1191 = vmatpush.bf16.msra.mxu0 %v2546_v47  ;;  %861 = vmatmul.bf16.vlgmr.msrb.gmra.mxu1 %v3162_v3 }
  0x7d   : > { %1210 = vmatpush.bf16.msra.mxu1 %v2554_v45  ;;  %880 = vmatmul.bf16.vlgmr.msrb.gmra.mxu2 %v3160_v2  ;;  %v2551_v2 = vld [vmem:[#allocation8 + $0x60] sm:$0xff] }
  0x7e   : > { %899 = vmatmul.bf16.vlgmr.msrb.gmra.mxu3 %v3162_v3  ;;  %v2541_v3 = vld [vmem:[#allocation8 + $0x10] sm:$0xff]  ;;  %1229 = vmatpush.bf16.msra.mxu2 %v2562_v30 }
  0x7f   : > { %1248 = vmatpush.bf16.msra.mxu3 %v2570_v60 }
  0x80   : > { %1192 = vmatpush.bf16.msra.mxu0 %v2545_v48 }
  0x81   : > { %1211 = vmatpush.bf16.msra.mxu1 %v2553_v49 }
  0x82   : > { %1230 = vmatpush.bf16.msra.mxu2 %v2561_v59 }
  0x83   : > { %1249 = vmatpush.bf16.msra.mxu3 %v2569_v62 }
  0x84   : > { %1193 = vmatpush.bf16.msra.mxu0 %v2544_v50 }
  0x85   : > { %1212 = vmatpush.bf16.msra.mxu1 %v2552_v52 }
  0x86   : > { %1231 = vmatpush.bf16.msra.mxu2 %v2560_v61 }
  0x87   : > { %1250 = vmatpush.bf16.msra.mxu3 %v2568_v4 }
  0x88   : > { %1194 = vmatpush.bf16.msra.mxu0 %v2543_v51 }
  0x89   : > { %1213 = vmatpush.bf16.msra.mxu1 %v2551_v2 }
  0x8b   : > { %847 = vmatmul.bf16.gmra.mxu0 %v3180_v0  ;;  %1251 = vmatpush.bf16.msra.mxu3 %v2567_v8 }
  0x8c   : > { %866 = vmatmul.bf16.gmra.mxu1 %v3182_v7  ;;  %1195 = vmatpush.bf16.msra.mxu0 %v2542_v26 }
  0x8d   : > { %885 = vmatmul.bf16.gmra.mxu2 %v3180_v0  ;;  %1214 = vmatpush.bf16.msra.mxu1 %v2550_v53  ;;  %v2559_v0 = vld [vmem:[#allocation8 + $0xa0] sm:$0xff] }
  0x8e   : > { %904 = vmatmul.bf16.gmra.mxu3 %v3182_v7  ;;  %1232 = vmatpush.bf16.msra.mxu2 %v2559_v0  ;;  %v2558_v7 = vld [vmem:[#allocation8 + $0x98] sm:$0xff]  ;;  %v433_v0 = vperm.slane %v3196_v63, 3 }
  0x8f   : > { %1252 = vmatpush.bf16.msra.mxu3 %v2566_v15 }
  0x90   : > { %1196 = vmatpush.bf16.msra.mxu0 %v2541_v3 }
  0x91   : > { %1215 = vmatpush.bf16.msra.mxu1 %v2549_v55 }
  0x92   : > { %1233 = vmatpush.bf16.msra.mxu2 %v2558_v7 }
  0x93   : > { %1253 = vmatpush.bf16.msra.mxu3 %v2565_v22 }
  0x94   : > { %1197 = vmatpush.bf16.msra.mxu0 %v2540_v54 }
  0x95   : > { %1216 = vmatpush.bf16.msra.mxu1 %v2548_v57  ;;  %v432_v57 = vperm.slane %v3196_v63, 2 }
  0x96   : > { %1234 = vmatpush.bf16.msra.mxu2 %v2557_v10 }
  0x97   : > { %1254 = vmatpush.bf16.msra.mxu3 %v2564_v36 }
  0x98   : > { %1198 = vmatpush.bf16.msra.mxu0 %v2539_v56 }
  0x99   : > { %1217 = vmatpush.bf16.msra.mxu1 %v2547_v58 }
  0x9a   : > { %1235 = vmatpush.bf16.msra.mxu2 %v2556_v19 }
  0x9b   : > { %1255 = vmatpush.bf16.msra.mxu3 %v2563_v25 }
  0x9e   : > { %1236 = vmatpush.bf16.msra.mxu2 %v2555_v27 }
  0xd8   : > { %v767_v1 = vpop.f32.mrf.mxu0 }
  0xd9   : > { %v786_v6 = vpop.f32.mrf.mxu1  ;;  %v768_v9 = vadd.f32 %v767_v1, %v430_v5 }
  0xdb   : > { %v787_v16 = vadd.f32 %v786_v6, %v768_v9 }
  0xdd   : > { %v910_v23 = vmax.f32 %v787_v16, 0.0 }
  0xe0   : > { %v805_v11 = vpop.f32.mrf.mxu2  ;;  %v769_v14 = vpop.f32.mrf.mxu0 }
  0xe1   : > { %v824_v13 = vpop.f32.mrf.mxu3  ;;  %v770_v17 = vadd.f32 %v769_v14, %v430_v5  ;;  %v788_v18 = vpop.f32.mrf.mxu1  ;;  %v806_v21 = vadd.f32 %v805_v11, %v431_v12 }
  0xe3   : > { %v789_v20 = vadd.f32 %v788_v18, %v770_v17  ;;  %v825_v32 = vadd.f32 %v824_v13, %v806_v21 }
  0xe5   : > { %v914_v24 = vmax.f32 %v789_v20, 0.0  ;;  %v911_v39 = vmax.f32 %v825_v32, 0.0 }
  0xe7   : > { %v926_v28 = vpack.c.bf16 %v914_v24, %v910_v23 }
  0xe8   : > { %v807_v31 = vpop.f32.mrf.mxu2  ;;  %v772_v35 = vpop.f32.mrf.mxu0 }
  0xe9   : > { %v808_v33 = vadd.f32 %v807_v31, %v431_v12  ;;  %v826_v34 = vpop.f32.mrf.mxu3  ;;  %v791_v37 = vpop.f32.mrf.mxu1  ;;  %1199 = vmatmul.bf16.vlgmr.msra.gmra.mxu0 %v926_v28  ;;  %v773_v41 = vadd.f32 %v772_v35, %v430_v5 }
  0xeb   : > { %v827_v38 = vadd.f32 %v826_v34, %v808_v33  ;;  %v792_v46 = vadd.f32 %v791_v37, %v773_v41 }
  0xed   : > { %v915_v40 = vmax.f32 %v827_v38, 0.0  ;;  %v918_v50 = vmax.f32 %v792_v46, 0.0  ;;  %v2576_v46 = vld [vmem:[#allocation10 + $0x28] sm:$0xff] }
  0xef   : > { %v927_v42 = vpack.c.bf16 %v915_v40, %v911_v39 }
  0xf0   : > { %v810_v43 = vpop.f32.mrf.mxu2  ;;  %v774_v45 = vpop.f32.mrf.mxu0 }
  0xf1   : > { %v829_v44 = vpop.f32.mrf.mxu3  ;;  %1218 = vmatmul.bf16.vlgmr.msra.gmra.mxu1 %v927_v42  ;;  %v775_v29 = vadd.f32 %v774_v45, %v430_v5  ;;  %v793_v47 = vpop.f32.mrf.mxu1  ;;  %v811_v49 = vadd.f32 %v810_v43, %v431_v12  ;;  %v2577_v45 = vld [vmem:[#allocation10 + $0x30] sm:$0xff] }
  0xf3   : > { %v794_v48 = vadd.f32 %v793_v47, %v775_v29  ;;  %v830_v2 = vadd.f32 %v829_v44, %v811_v49  ;;  %v2578_v44 = vld [vmem:[#allocation10 + $0x38] sm:$0xff]  ;;  %v2575_v29 = vld [vmem:[#allocation10 + $0x20] sm:$0xff]  ;;  %v2572_v49 = vld [vmem:[#allocation10 + $0x8] sm:$0xff] }
  0xf4   : > { %1338 = vmatpush.bf16.msrb.mxu0 %v2578_v44  ;;  %v2574_v47 = vld [vmem:[#allocation10 + $0x18] sm:$0xff] }
  0xf5   : > { %v922_v51 = vmax.f32 %v794_v48, 0.0  ;;  %v919_v30 = vmax.f32 %v830_v2, 0.0  ;;  %v2573_v48 = vld [vmem:[#allocation10 + $0x10] sm:$0xff] }
  0xf7   : > { %v930_v26 = vpack.c.bf16 %v922_v51, %v918_v50  ;;  %v2571_v50 = vld [vmem:[#allocation10] sm:$0xff] }
  0xf8   : > { %v812_v52 = vpop.f32.mrf.mxu2  ;;  %v843_v54 = vpop.f32.mrf.mxu0  ;;  %1339 = vmatpush.bf16.msrb.mxu0 %v2577_v45 }
  0xf9   : > { %v813_v3 = vadd.f32 %v812_v52, %v431_v12  ;;  %v831_v53 = vpop.f32.mrf.mxu3  ;;  %v862_v55 = vpop.f32.mrf.mxu1  ;;  %1204 = vmatmul.bf16.gmra.mxu0 %v930_v26  ;;  %v844_v59 = vadd.f32 %v843_v54, %v432_v57  ;;  %v2586_v54 = vld [vmem:[#allocation10 + $0x78] sm:$0xff] }
  0xfa   : > { %1429 = vmatpush.bf16.msrb.mxu1 %v2586_v54  ;;  %v2602_v54 = vld [vmem:[#allocation10 + $0xf8] sm:$0xff] }
  0xfb   : > { %v832_v56 = vadd.f32 %v831_v53, %v813_v3  ;;  %v863_v5 = vadd.f32 %v862_v55, %v844_v59  ;;  %v998_v3 = vld [vmem:[#allocation5 + $0x3] ss:$0 sm:$0xff]  ;;  %1611 = vmatpush.bf16.msrb.mxu3 %v2602_v54 }
  0xfc   : > { %1340 = vmatpush.bf16.msrb.mxu0 %v2576_v46 }
  0xfd   : > { %v923_v58 = vmax.f32 %v832_v56, 0.0  ;;  %v912_v9 = vmax.f32 %v863_v5, 0.0 }
  0xff   : > { %v931_v60 = vpack.c.bf16 %v923_v58, %v919_v30  ;;  %v2585_v30 = vld [vmem:[#allocation10 + $0x70] sm:$0xff] }
 0x100   : > { %v881_v61 = vpop.f32.mrf.mxu2  ;;  %v845_v1 = vpop.f32.mrf.mxu0  ;;  %1341 = vmatpush.bf16.msrb.mxu0 %v2575_v29  ;;  %1430 = vmatpush.bf16.msrb.mxu1 %v2585_v30  ;;  %v2590_v29 = vld [vmem:[#allocation10 + $0x98] sm:$0xff]  ;;  %v2600_v30 = vld [vmem:[#allocation10 + $0xe8] sm:$0xff] }
 0x101   : > { %v900_v62 = vpop.f32.mrf.mxu3  ;;  %1223 = vmatmul.bf16.gmra.mxu1 %v931_v60  ;;  %v864_v4 = vpop.f32.mrf.mxu1  ;;  %v846_v6 = vadd.f32 %v845_v1, %v432_v57  ;;  %v882_v8 = vadd.f32 %v881_v61, %v433_v0 }
 0x103   : > { %v865_v7 = vadd.f32 %v864_v4, %v846_v6  ;;  %v901_v14 = vadd.f32 %v900_v62, %v882_v8  ;;  %v2584_v62 = vld [vmem:[#allocation10 + $0x68] sm:$0xff]  ;;  %v2583_v8 = vld [vmem:[#allocation10 + $0x60] sm:$0xff] }
 0x104   : > { %1342 = vmatpush.bf16.msrb.mxu0 %v2574_v47  ;;  %1431 = vmatpush.bf16.msrb.mxu1 %v2584_v62 }
 0x105   : > { %v916_v10 = vmax.f32 %v865_v7, 0.0  ;;  %v913_v19 = vmax.f32 %v901_v14, 0.0 }
 0x107   : > { %v928_v11 = vpack.c.bf16 %v916_v10, %v912_v9 }
 0x108   : > { %v883_v12 = vpop.f32.mrf.mxu2  ;;  %v848_v16 = vpop.f32.mrf.mxu0  ;;  %1343 = vmatpush.bf16.msrb.mxu0 %v2573_v48  ;;  %1432 = vmatpush.bf16.msrb.mxu1 %v2583_v8 }
 0x109   : > { %v902_v13 = vpop.f32.mrf.mxu3  ;;  %v884_v15 = vadd.f32 %v883_v12, %v433_v0  ;;  %v867_v17 = vpop.f32.mrf.mxu1  ;;  %1237 = vmatmul.bf16.vlgmr.msra.gmra.mxu2 %v928_v11  ;;  %v849_v63 = vadd.f32 %v848_v16, %v432_v57 }
 0x10b   : > { %v903_v18 = vadd.f32 %v902_v13, %v884_v15  ;;  %v868_v27 = vadd.f32 %v867_v17, %v849_v63  ;;  %v2582_v13 = vld [vmem:[#allocation10 + $0x58] sm:$0xff] }
 0x10c   : > { %1344 = vmatpush.bf16.msrb.mxu0 %v2572_v49  ;;  %1433 = vmatpush.bf16.msrb.mxu1 %v2582_v13  ;;  %v2596_v13 = vld [vmem:[#allocation10 + $0xc8] sm:$0xff] }
 0x10d   : > { %v917_v20 = vmax.f32 %v903_v18, 0.0  ;;  %v920_v34 = vmax.f32 %v868_v27, 0.0 }
 0x10f   : > { %v929_v21 = vpack.c.bf16 %v917_v20, %v913_v19 }
 0x110   : > { %v886_v22 = vpop.f32.mrf.mxu2  ;;  %v850_v24 = vpop.f32.mrf.mxu0  ;;  %1345 = vmatpush.bf16.msrb.mxu0 %v2571_v50 }
 0x111   : > { %v905_v23 = vpop.f32.mrf.mxu3  ;;  %1256 = vmatmul.bf16.vlgmr.msra.gmra.mxu3 %v929_v21  ;;  %v851_v28 = vadd.f32 %v850_v24, %v432_v57  ;;  %v869_v31 = vpop.f32.mrf.mxu1  ;;  %v887_v33 = vadd.f32 %v886_v22, %v433_v0 }
 0x113   : > { %v870_v32 = vadd.f32 %v869_v31, %v851_v28  ;;  %v906_v38 = vadd.f32 %v905_v23, %v887_v33  ;;  %v2581_v33 = vld [vmem:[#allocation10 + $0x50] sm:$0xff] }
 0x114   : > { %1434 = vmatpush.bf16.msrb.mxu1 %v2581_v33 }
 0x115   : > { %v924_v35 = vmax.f32 %v870_v32, 0.0  ;;  %v921_v41 = vmax.f32 %v906_v38, 0.0  ;;  %v2593_v38 = vld [vmem:[#allocation10 + $0xb0] sm:$0xff] }
 0x117   : > { %v932_v37 = vpack.c.bf16 %v924_v35, %v920_v34  ;;  %v2580_v34 = vld [vmem:[#allocation10 + $0x48] sm:$0xff]  ;;  %v2579_v35 = vld [vmem:[#allocation10 + $0x40] sm:$0xff] }
 0x118   : > { %v888_v36 = vpop.f32.mrf.mxu2  ;;  %1435 = vmatpush.bf16.msrb.mxu1 %v2580_v34 }
 0x119   : > { %v889_v39 = vadd.f32 %v888_v36, %v433_v0  ;;  %v907_v40 = vpop.f32.mrf.mxu3  ;;  %1242 = vmatmul.bf16.gmra.mxu2 %v932_v37  ;;  %v2594_v36 = vld [vmem:[#allocation10 + $0xb8] sm:$0xff] }
 0x11a   : > { %1520 = vmatpush.bf16.msrb.mxu2 %v2594_v36 }
 0x11b   : > { %v908_v25 = vadd.f32 %v907_v40, %v889_v39  ;;  %v1289_v39 = vld [vmem:[#allocation5 + $0x4] ss:$0 sm:$0xff]  ;;  %v2592_v40 = vld [vmem:[#allocation10 + $0xa8] sm:$0xff] }
 0x11c   : > { %1436 = vmatpush.bf16.msrb.mxu1 %v2579_v35 }
 0x11d   : > { %v925_v42 = vmax.f32 %v908_v25, 0.0 }
 0x11e   : > { %1521 = vmatpush.bf16.msrb.mxu2 %v2593_v38 }
 0x11f   : > { %v933_v43 = vpack.c.bf16 %v925_v42, %v921_v41 }
 0x121   : > { %1261 = vmatmul.bf16.gmra.mxu3 %v933_v43  ;;  %v2591_v43 = vld [vmem:[#allocation10 + $0xa0] sm:$0xff] }
 0x122   : > { %1522 = vmatpush.bf16.msrb.mxu2 %v2592_v40  ;;  %v2605_v40 = vld [vmem:[#allocation10 + $0x110] sm:$0xff] }
 0x126   : > { %1523 = vmatpush.bf16.msrb.mxu2 %v2591_v43  ;;  %v1562_v43 = vld [vmem:[#allocation5 + $0x7] ss:$0 sm:$0xff] }
 0x12a   : > { %1524 = vmatpush.bf16.msrb.mxu2 %v2590_v29 }
 0x166   : > { %v1200_v51 = vpop.f32.mrf.mxu0 }
 0x167   : > { %v1201_v56 = vadd.f32 %v1200_v51, %v998_v3 }
 0x16e   : > { %v1219_v52 = vpop.f32.mrf.mxu1  ;;  %v1202_v2 = vpop.f32.mrf.mxu0 }
 0x16f   : > { %v1220_v58 = vadd.f32 %v1219_v52, %v1201_v56  ;;  %v1203_v59 = vadd.f32 %v1202_v2, %v998_v3  ;;  %v2589_v2 = vld [vmem:[#allocation10 + $0x90] sm:$0xff] }
 0x170   : > { %1525 = vmatpush.bf16.msrb.mxu2 %v2589_v2  ;;  %v2601_v56 = vld [vmem:[#allocation10 + $0xf0] sm:$0xff] }
 0x171   : > { %1612 = vmatpush.bf16.msrb.mxu3 %v2601_v56 }
 0x175   : > { %1613 = vmatpush.bf16.msrb.mxu3 %v2600_v30  ;;  %v1667_v30 = vld [vmem:[#allocation5 + $0x20] ss:$0 sm:$0xff] }
 0x176   : > { %v1221_v53 = vpop.f32.mrf.mxu1  ;;  %v1205_v0 = vpop.f32.mrf.mxu0 }
 0x177   : > { %v1222_v60 = vadd.f32 %v1221_v53, %v1203_v59  ;;  %v1206_v16 = vadd.f32 %v1205_v0, %v998_v3  ;;  %v2587_v53 = vld [vmem:[#allocation10 + $0x80] sm:$0xff] }
 0x17e   : > { %v1224_v5 = vpop.f32.mrf.mxu1  ;;  %v1207_v14 = vpop.f32.mrf.mxu0 }
 0x17f   : > { %v1225_v18 = vadd.f32 %v1224_v5, %v1206_v16  ;;  %v1208_v19 = vadd.f32 %v1207_v14, %v998_v3  ;;  %v2588_v3 = vld [vmem:[#allocation10 + $0x88] sm:$0xff]  ;;  %v2595_v14 = vld [vmem:[#allocation10 + $0xc0] sm:$0xff]  ;;  %v2610_v16 = vld [vmem:[#allocation10 + $0x138] sm:$0xff] }
 0x180   : > { %1526 = vmatpush.bf16.msrb.mxu2 %v2588_v3  ;;  %1716 = vmatpush.bf16.msra.mxu0 %v2610_v16 }
 0x181   : > { %2612 = vmatpush.bf16.msra.mxu1 %v2610_v16 }
 0x184   : > { %1527 = vmatpush.bf16.msrb.mxu2 %v2587_v53 }
 0x186   : > { %v1226_v17 = vpop.f32.mrf.mxu1 }
 0x187   : > { %v1227_v63 = vadd.f32 %v1226_v17, %v1208_v19  ;;  %v2609_v19 = vld [vmem:[#allocation10 + $0x130] sm:$0xff] }
 0x188   : > { %1717 = vmatpush.bf16.msra.mxu0 %v2609_v19  ;;  %2613 = vmatpush.bf16.msra.mxu1 %v2609_v19 }
 0x18c   : > { %v1238_v26 = vpop.f32.mrf.mxu2 }
 0x18d   : > { %v1239_v61 = vadd.f32 %v1238_v26, %v1220_v58 }
 0x194   : > { %v1257_v55 = vpop.f32.mrf.mxu3  ;;  %v1240_v57 = vpop.f32.mrf.mxu2 }
 0x195   : > { %v1258_v1 = vadd.f32 %v1257_v55, %v1239_v61  ;;  %v1241_v4 = vadd.f32 %v1240_v57, %v1222_v60  ;;  %v1380_v57 = vld [vmem:[#allocation5 + $0x5] ss:$0 sm:$0xff] }
 0x196   : > { %v2599_v61 = vld [vmem:[#allocation10 + $0xe0] sm:$0xff] }
 0x197   : > { %v1267_v10 = vmax.f32 %v1258_v1, 0.0  ;;  %1614 = vmatpush.bf16.msrb.mxu3 %v2599_v61 }
 0x19c   : > { %v1259_v6 = vpop.f32.mrf.mxu3  ;;  %v1243_v9 = vpop.f32.mrf.mxu2 }
 0x19d   : > { %v1260_v7 = vadd.f32 %v1259_v6, %v1241_v4  ;;  %v1244_v21 = vadd.f32 %v1243_v9, %v1225_v18  ;;  %v2598_v4 = vld [vmem:[#allocation10 + $0xd8] sm:$0xff]  ;;  %v2969_v18 = vmov 0  }
 0x19e   : > { %1615 = vmatpush.bf16.msrb.mxu3 %v2598_v4  ;;  %2716 = vset.pattern.permute.xlu0 %v2969_v18 }
 0x19f   : > { %v1268_v11 = vmax.f32 %v1260_v7, 0.0 }
 0x1a1   : > { %v1271_v12 = vpack.c.bf16 %v1268_v11, %v1267_v10 }
 0x1a3   : > { %1346 = vmatmul.bf16.vlgmr.msrb.gmra.mxu0 %v1271_v12  ;;  %v2597_v12 = vld [vmem:[#allocation10 + $0xd0] sm:$0xff] }
 0x1a4   : > { %v1262_v15 = vpop.f32.mrf.mxu3  ;;  %v1245_v20 = vpop.f32.mrf.mxu2  ;;  %1616 = vmatpush.bf16.msrb.mxu3 %v2597_v12 }
 0x1a5   : > { %v1263_v22 = vadd.f32 %v1262_v15, %v1244_v21  ;;  %v1246_v23 = vadd.f32 %v1245_v20, %v1227_v63  ;;  %v1630_v15 = vld [vmem:[#allocation5 + $0x21] ss:$0 sm:$0xff]  ;;  %v1471_v20 = vld [vmem:[#allocation5 + $0x6] ss:$0 sm:$0xff]  ;;  %v2608_v63 = vld [vmem:[#allocation10 + $0x128] sm:$0xff] }
 0x1a6   : > { %1637 = vperm.xlu0 %2716, %v1630_v15   ;;  %1718 = vmatpush.bf16.msra.mxu0 %v2608_v63 }
 0x1a7   : > { %v1269_v28 = vmax.f32 %v1263_v22, 0.0  ;;  %2614 = vmatpush.bf16.msra.mxu1 %v2608_v63 }
 0x1a8   : > { %1617 = vmatpush.bf16.msrb.mxu3 %v2596_v13 }
 0x1ac   : > { %v1264_v24 = vpop.f32.mrf.mxu3  ;;  %1618 = vmatpush.bf16.msrb.mxu3 %v2595_v14 }
 0x1ad   : > { %v1265_v27 = vadd.f32 %v1264_v24, %v1246_v23  ;;  %v2607_v24 = vld [vmem:[#allocation10 + $0x120] sm:$0xff] }
 0x1ae   : > { %1719 = vmatpush.bf16.msra.mxu0 %v2607_v24  ;;  %2615 = vmatpush.bf16.msra.mxu1 %v2607_v24 }
 0x1af   : > { %v1270_v31 = vmax.f32 %v1265_v27, 0.0 }
 0x1b1   : > { %v1272_v32 = vpack.c.bf16 %v1270_v31, %v1269_v28 }
 0x1b3   : > { %1351 = vmatmul.bf16.gmra.mxu0 %v1272_v32 }
 0x220   : > { %v1347_v37 = vpop.f32.mrf.mxu0 }
 0x221   : > { %v1348_v25 = vadd.f32 %v1347_v37, %v1289_v39 }
 0x223   : > { %v1357_v44 = vmax.f32 %v1348_v25, 0.0  ;;  %v2604_v25 = vld [vmem:[#allocation10 + $0x108] sm:$0xff] }
 0x228   : > { %v1349_v41 = vpop.f32.mrf.mxu0 }
 0x229   : > { %v1350_v42 = vadd.f32 %v1349_v41, %v1289_v39  ;;  %v2603_v41 = vld [vmem:[#allocation10 + $0x100] sm:$0xff] }
 0x22b   : > { %v1358_v45 = vmax.f32 %v1350_v42, 0.0 }
 0x22d   : > { %v1361_v46 = vpack.c.bf16 %v1358_v45, %v1357_v44  ;;  %v1638_v45 = vpop.permute.xlu0 %1637 }
 0x22f   : > { %1437 = vmatmul.bf16.vlgmr.msrb.gmra.mxu1 %v1361_v46 }
 0x230   : > { %v1352_v47 = vpop.f32.mrf.mxu0 }
 0x231   : > { %v1353_v48 = vadd.f32 %v1352_v47, %v1289_v39 }
 0x233   : > { %v1359_v51 = vmax.f32 %v1353_v48, 0.0 }
 0x238   : > { %v1354_v49 = vpop.f32.mrf.mxu0 }
 0x239   : > { %v1355_v50 = vadd.f32 %v1354_v49, %v1289_v39  ;;  %v2606_v39 = vld [vmem:[#allocation10 + $0x118] sm:$0xff] }
 0x23a   : > { %1720 = vmatpush.bf16.msra.mxu0 %v2606_v39  ;;  %2616 = vmatpush.bf16.msra.mxu1 %v2606_v39 }
 0x23b   : > { %v1360_v52 = vmax.f32 %v1355_v50, 0.0 }
 0x23d   : > { %v1362_v26 = vpack.c.bf16 %v1360_v52, %v1359_v51 }
 0x23e   : > { %1721 = vmatpush.bf16.msra.mxu0 %v2605_v40  ;;  %2617 = vmatpush.bf16.msra.mxu1 %v2605_v40 }
 0x23f   : > { %1442 = vmatmul.bf16.gmra.mxu1 %v1362_v26 }
 0x242   : > { %1722 = vmatpush.bf16.msra.mxu0 %v2604_v25  ;;  %2618 = vmatpush.bf16.msra.mxu1 %v2604_v25 }
 0x246   : > { %1723 = vmatpush.bf16.msra.mxu0 %v2603_v41  ;;  %2619 = vmatpush.bf16.msra.mxu1 %v2603_v41 }
 0x2ac   : > { %v1438_v55 = vpop.f32.mrf.mxu1 }
 0x2ad   : > { %v1439_v58 = vadd.f32 %v1438_v55, %v1380_v57 }
 0x2af   : > { %v1448_v62 = vmax.f32 %v1439_v58, 0.0 }
 0x2b4   : > { %v1440_v59 = vpop.f32.mrf.mxu1 }
 0x2b5   : > { %v1441_v60 = vadd.f32 %v1440_v59, %v1380_v57 }
 0x2b7   : > { %v1449_v0 = vmax.f32 %v1441_v60, 0.0 }
 0x2b9   : > { %v1452_v1 = vpack.c.bf16 %v1449_v0, %v1448_v62 }
 0x2bb   : > { %1528 = vmatmul.bf16.vlgmr.msrb.gmra.mxu2 %v1452_v1 }
 0x2bc   : > { %v1443_v5 = vpop.f32.mrf.mxu1 }
 0x2bd   : > { %v1444_v6 = vadd.f32 %v1443_v5, %v1380_v57 }
 0x2bf   : > { %v1450_v9 = vmax.f32 %v1444_v6, 0.0 }
 0x2c4   : > { %v1445_v7 = vpop.f32.mrf.mxu1 }
 0x2c5   : > { %v1446_v8 = vadd.f32 %v1445_v7, %v1380_v57 }
 0x2c7   : > { %v1451_v10 = vmax.f32 %v1446_v8, 0.0 }
 0x2c9   : > { %v1453_v11 = vpack.c.bf16 %v1451_v10, %v1450_v9 }
 0x2cb   : > { %1533 = vmatmul.bf16.gmra.mxu2 %v1453_v11 }
 0x33e   : > { %v1529_v17 = vpop.f32.mrf.mxu2 }
 0x33f   : > { %v1530_v21 = vadd.f32 %v1529_v17, %v1471_v20 }
 0x341   : > { %v1539_v27 = vmax.f32 %v1530_v21, 0.0 }
 0x346   : > { %v1531_v22 = vpop.f32.mrf.mxu2 }
 0x347   : > { %v1532_v23 = vadd.f32 %v1531_v22, %v1471_v20 }
 0x349   : > { %v1540_v28 = vmax.f32 %v1532_v23, 0.0 }
 0x34b   : > { %v1543_v31 = vpack.c.bf16 %v1540_v28, %v1539_v27 }
 0x34d   : > { %1619 = vmatmul.bf16.vlgmr.msrb.gmra.mxu3 %v1543_v31 }
 0x34e   : > { %v1534_v32 = vpop.f32.mrf.mxu2 }
 0x34f   : > { %v1535_v33 = vadd.f32 %v1534_v32, %v1471_v20 }
 0x351   : > { %v1541_v36 = vmax.f32 %v1535_v33, 0.0 }
 0x356   : > { %v1536_v34 = vpop.f32.mrf.mxu2 }
 0x357   : > { %v1537_v35 = vadd.f32 %v1536_v34, %v1471_v20 }
 0x359   : > { %v1542_v37 = vmax.f32 %v1537_v35, 0.0 }
 0x35b   : > { %v1544_v38 = vpack.c.bf16 %v1542_v37, %v1541_v36 }
 0x35d   : > { %1624 = vmatmul.bf16.gmra.mxu3 %v1544_v38 }
 0x3d0   : > { %v1620_v42 = vpop.f32.mrf.mxu3 }
 0x3d1   : > { %v1621_v44 = vadd.f32 %v1620_v42, %v1562_v43 }
 0x3d3   : > { %v1640_v29 = vmul.f32 %v1638_v45, %v1621_v44  ;;  %vm1631_vm0 = vcmp.gt.f32.partialorder %v1621_v44, 0.0 }
 0x3d5   : > { %v1644_v49 = vsel %vm1631_vm0, %v1621_v44, %v1640_v29 }
 0x3d8   : > { %v1622_v46 = vpop.f32.mrf.mxu3 }
 0x3d9   : > { %v1623_v47 = vadd.f32 %v1622_v46, %v1562_v43 }
 0x3db   : > { %vm1632_vm1 = vcmp.gt.f32.partialorder %v1623_v47, 0.0  ;;  %v1641_v48 = vmul.f32 %v1638_v45, %v1623_v47 }
 0x3dd   : > { %v1645_v50 = vsel %vm1632_vm1, %v1623_v47, %v1641_v48 }
 0x3de   : > { %v1648_v51 = vpack.c.bf16 %v1645_v50, %v1644_v49 }
 0x3e0   : > { %v1625_v52 = vpop.f32.mrf.mxu3  ;;  %1724 = vmatmul.bf16.vlgmr.msra.gmra.mxu0 %v1648_v51 }
 0x3e1   : > { %v1626_v26 = vadd.f32 %v1625_v52, %v1562_v43 }
 0x3e3   : > { %v1642_v3 = vmul.f32 %v1638_v45, %v1626_v26  ;;  %vm1633_vm2 = vcmp.gt.f32.partialorder %v1626_v26, 0.0 }
 0x3e5   : > { %v1646_v55 = vsel %vm1633_vm2, %v1626_v26, %v1642_v3 }
 0x3e8   : > { %v1627_v2 = vpop.f32.mrf.mxu3 }
 0x3e9   : > { %v1628_v53 = vadd.f32 %v1627_v2, %v1562_v43 }
 0x3eb   : > { %vm1634_vm3 = vcmp.gt.f32.partialorder %v1628_v53, 0.0  ;;  %v1643_v54 = vmul.f32 %v1638_v45, %v1628_v53 }
 0x3ed   : > { %v1647_v56 = vsel %vm1634_vm3, %v1628_v53, %v1643_v54 }
 0x3ee   : > { %v1649_v57 = vpack.c.bf16 %v1647_v56, %v1646_v55 }
 0x3f0   : > { %1729 = vmatmul.bf16.vlgmr.msra.gmra.mxu1 %v1649_v57 }
 0x45d   : > { %v1725_v58 = vpop.f32.mrf.mxu0 }
 0x45e   : > { %v1726_v59 = vadd.f32 %v1725_v58, %v1667_v30 }
 0x460   : > { %1735 = vmax.xlane.f32.xlu0 %v1726_v59 }
 0x465   : > { %v1727_v60 = vpop.f32.mrf.mxu0 }
 0x466   : > { %v1728_v61 = vadd.f32 %v1727_v60, %v1667_v30 }
 0x468   : > { %1737 = vmax.xlane.f32.xlu1 %v1728_v61 }
 0x46d   : > { %v1730_v62 = vpop.f32.mrf.mxu1 }
 0x46e   : > { %v1731_v0 = vadd.f32 %v1730_v62, %v1667_v30 }
 0x470   : > { %1739 = vmax.xlane.f32.xlu1 %v1731_v0 }
 0x475   : > { %v1732_v1 = vpop.f32.mrf.mxu1 }
 0x476   : > { %v1733_v4 = vadd.f32 %v1732_v1, %v1667_v30 }
 0x478   : > { %1741 = vmax.xlane.f32.xlu2 %v1733_v4 }
 0x4d3   : > { %v1736_v5 = vpop.xlane.xlu0 %1735 }
 0x4d4   : > { %v1743_v6 = vsub.f32 %v1726_v59, %v1736_v5 }
 0x4d6   : > { %v1747_v7 = vmul.f32 1.442695, %v1743_v6 }
 0x4d8   : > { %2717 = vpow2.f32 %v1747_v7 }
 0x4db   : > { %v1738_v8 = vpop.xlane.xlu1 %1737 }
 0x4dc   : > { %v1744_v9 = vsub.f32 %v1728_v61, %v1738_v8 }
 0x4de   : > { %v2718_v10 = vpop.eup %2717  ;;  %v1749_v11 = vmul.f32 1.442695, %v1744_v9 }
 0x4df   : > { %1755 = vadd.xlane.f32.xlu2 %v2718_v10 }
 0x4e0   : > { %2719 = vpow2.f32 %v1749_v11 }
 0x4e3   : > { %v1740_v12 = vpop.xlane.xlu1 %1739 }
 0x4e4   : > { %v1745_v13 = vsub.f32 %v1731_v0, %v1740_v12 }
 0x4e6   : > { %v2720_v14 = vpop.eup %2719  ;;  %v1751_v15 = vmul.f32 1.442695, %v1745_v13 }
 0x4e7   : > { %1757 = vadd.xlane.f32.xlu1 %v2720_v14 }
 0x4e8   : > { %2721 = vpow2.f32 %v1751_v15 }
 0x4eb   : > { %v1742_v16 = vpop.xlane.xlu2 %1741 }
 0x4ec   : > { %v1746_v17 = vsub.f32 %v1733_v4, %v1742_v16 }
 0x4ee   : > { %v2722_v18 = vpop.eup %2721  ;;  %v1753_v19 = vmul.f32 1.442695, %v1746_v17 }
 0x4ef   : > { %1759 = vadd.xlane.f32.xlu2 %v2722_v18 }
 0x4f0   : > { %2723 = vpow2.f32 %v1753_v19 }
 0x4f6   : > { %v2724_v20 = vpop.eup %2723 }
 0x4f7   : > { %1761 = vadd.xlane.f32.xlu1 %v2724_v20 }
 0x552   : > { %v1756_v63 = vpop.xlane.xlu2 %1755 }
 0x553   : > { %2725 = vlog2.f32 %v1756_v63 }
 0x559   : > { %v2726_v21 = vpop.eup %2725 }
 0x55a   : > { %v1764_v22 = vmul.f32 0.6931472, %v2726_v21  ;;  %v1758_v23 = vpop.xlane.xlu1 %1757 }
 0x55b   : > { %2727 = vlog2.f32 %v1758_v23 }
 0x55c   : > { %v1771_v24 = vsub.f32 %v1743_v6, %v1764_v22 }
 0x55e   : > { %1775 = vst [vmem:[%s311_s29] sm:$0xff] %v1771_v24 }
 0x561   : > { %v2728_v27 = vpop.eup %2727 }
 0x562   : > { %v1766_v28 = vmul.f32 0.6931472, %v2728_v27  ;;  %v1760_v31 = vpop.xlane.xlu2 %1759 }
 0x563   : > { %2729 = vlog2.f32 %v1760_v31 }
 0x564   : > { %v1772_v32 = vsub.f32 %v1744_v9, %v1766_v28 }
 0x566   : > { %1776 = vst [vmem:[%s311_s29 + $0x8] sm:$0xff] %v1772_v32 }
 0x569   : > { %v2730_v33 = vpop.eup %2729 }
 0x56a   : > { %v1768_v34 = vmul.f32 0.6931472, %v2730_v33  ;;  %v1762_v35 = vpop.xlane.xlu1 %1761 }
 0x56b   : > { %2731 = vlog2.f32 %v1762_v35 }
 0x56c   : > { %v1773_v36 = vsub.f32 %v1745_v13, %v1768_v34 }
 0x56e   : > { %1777 = vst [vmem:[%s311_s29 + $0x10] sm:$0xff] %v1773_v36 }
 0x571   : > { %v2732_v37 = vpop.eup %2731 }
 0x572   : > { %v1770_v38 = vmul.f32 0.6931472, %v2732_v37 }
 0x574   : > { %v1774_v39 = vsub.f32 %v1746_v17, %v1770_v38 }
 0x576   : > { %1778 = vst [vmem:[%s311_s29 + $0x18] sm:$0xff] %v1774_v39 }
 0x577   : > { %2910 = shalt.err (!%p2907_p10)
}
 0x578   : > { %s2970_s6 = smov 128   ;;  %s2971_s24 = smov 8  }
 0x579   : > { %2638 = dma.vmem_to_hbm [thread:$0]  (%p3089_p3), %s1793_s14, 512, %s1795_s7, %s1780_s16, %s2970_s6, %s2970_s6, %s2971_s24  }
 0x57a PF: > { %s1809_s29 = sand.u32 1, %s2945_s18   ;;  %p3250_p12 = scmp.ge.s32.totalorder %s2957_s21, 2 }
 0x57b   : > { %s1810_s10 = scalar_lea.sflag [#allocation4], %s1809_s29 }
 0x57c   : > { %p2658_p13 = pnand %p3250_p12, %p3037_p6 }
 0x57e   : > { %p2659_p0 = pneg %p2658_p13 }
 0x580   : > { %2940 = dma.done.wait (%p2659_p0), %s1810_s10, 512  }
 0x581   : > { %2942 = vsyncadd (%p2659_p0), %s1810_s10, 4294966784  ;;  %p20_p5 = scmp.ge.s32.totalorder %s3079_s13, 4   ;;  %s3251_s18 = smov %s2949_s19 }
 0x582   : > { %s3252_s19 = smov %s2953_s20  ;;  %s3253_s20 = smov %s3095_s26 }
 0x583   : > { %s3254_s21 = smov %s3079_s13  ;;  %22 = sbr.rel (!%p20_p5) target bundleno = 7 (0x7), region = 107 }
 0x588   :  { %1816 = vsyncpa [#allocation3], 1 }
 0x589   :  { %1818 = vsyncpa [#allocation3 + $0x1], 1 }
 0x58a   :  { %1819 = vsyncpa [#allocation6], 1 }
 0x58b   :  { %1820 = vsyncpa [#allocation9], 1 }
 0x58c   :  { %1821 = vsyncpa [#allocation4], 1 }
 0x58d   :  { %1823 = vsyncpa [#allocation4 + $0x1], 1 }

</bundles_post_ra>
